<compile_context>
chip_gen: v6e
topology: v6e:2x2x1
jax: 0.10.0
libtpu: 0.0.40
codegen_flags: <defaults>
</compile_context>

<pallas_src>
import functools

import jax
import jax.numpy as jnp
from jax import lax
from jax.experimental import pallas as pl
from jax.experimental.pallas import tpu as pltpu

_LANE = 128      # lane width (last dim multiple for dense stores)
_SUBLANE = 8     # f32 sublane granularity


def _round_up(n, m):
    return ((n + m - 1) // m) * m


def _fused_mlp_kernel(*refs, n_linear, chunk_rows):
    """One batch tile of the whole MLP.

    refs = (x, w0, b0, ..., w_{L-1}, b_{L-1}, out). Weights are lane-padded and
    already stored in the MXU dtype; biases are f32. The tile is processed in
    `chunk_rows`-row sub-blocks so activations never blow the register budget.
    """
    x_ref, o_ref = refs[0], refs[-1]
    wb = refs[1:-1]
    tile_m = x_ref.shape[0]
    n_chunks = tile_m // chunk_rows

    def chunk_body(c, carry):
        r0 = pl.multiple_of(c * chunk_rows, _SUBLANE)
        h = x_ref[pl.ds(r0, chunk_rows), :]
        for i in range(n_linear):                          # static unroll over layers
            w_ref = wb[2 * i]
            b_ref = wb[2 * i + 1]
            y = jnp.dot(h.astype(w_ref.dtype), w_ref[...],
                        preferred_element_type=jnp.float32)   # MXU, f32 accumulate
            y = y + b_ref[...]                                 # f32 epilogue (v5e-safe)
            if i < n_linear - 1:
                y = jnp.maximum(y, 0.0)                        # ReLU on all but last
            h = y
        o_ref[pl.ds(r0, chunk_rows), :] = h.astype(o_ref.dtype)
        return carry

    lax.fori_loop(0, n_chunks, chunk_body, 0, unroll=True)


def prepare_mlp_params(params, mxu_dtype=jnp.bfloat16):
    """Pad feature dims to 128 lanes and cast weights to the MXU dtype ONCE.

    Hoisted out of the per-call path so every forward does zero parameter
    padding/cast traffic. Zero padding is exact for Linear + ReLU. The first
    layer keeps the raw input width so x needs no feature padding.
    """
    prepared = []
    for li, (w, b) in enumerate(params):
        din, dout = w.shape
        din_p = din if li == 0 else _round_up(din, _LANE)
        dout_p = _round_up(dout, _LANE)
        wp = jnp.zeros((din_p, dout_p), mxu_dtype).at[:din, :dout].set(
            w.astype(mxu_dtype))
        bp = jnp.zeros((1, dout_p), jnp.float32).at[:, :dout].set(
            b.astype(jnp.float32))                 # bias stays f32 for the epilogue
        prepared.append((wp, bp))
    return prepared


def mlp_forward(x, prepared, output_dim, *, tile_m=512, chunk_rows=256,
                out_dtype=None):
    """Fused MLP forward. x: (B, Din); prepared: output of prepare_mlp_params."""
    B, Din = x.shape
    n_linear = len(prepared)
    assert prepared[0][0].shape[0] == Din, "prepare_mlp_params input_dim mismatch"
    dout_pad = prepared[-1][0].shape[1]
    out_dtype = x.dtype if out_dtype is None else out_dtype

    # Batch tiling: big tiles amortize per-grid-step overhead; the default gives
    # an even tile count (2 for B=1000) so v7x's 2 TensorCores split the batch.
    tile_m = _round_up(max(_SUBLANE, min(tile_m, _round_up(B, _SUBLANE))), _SUBLANE)
    b_pad = _round_up(B, tile_m)
    if chunk_rows >= tile_m or tile_m % chunk_rows:
        chunk_rows = tile_m                      # no in-tile sub-chunking

    # Pad the batch dim only (cheap); feature dim stays raw.
    xp = x if b_pad == B else jnp.zeros((b_pad, Din), x.dtype).at[:B, :].set(x)

    grid = (b_pad // tile_m,)
    in_specs = [pl.BlockSpec((tile_m, Din), lambda i: (i, 0))]
    flat_params = []
    for (wp, bp) in prepared:
        in_specs.append(pl.BlockSpec(wp.shape, lambda i: (0, 0)))
        in_specs.append(pl.BlockSpec(bp.shape, lambda i: (0, 0)))
        flat_params.extend([wp, bp])
    out_spec = pl.BlockSpec((tile_m, dout_pad), lambda i: (i, 0))

    # VMEM footprint: BlockSpec double-buffers every operand (weights included).
    # TODO(synk): for hidden sizes whose resident weights exceed ~40 MiB, stream
    # weights per layer (extra 'arbitrary' grid axis) so the fused design still
    # fits v7x's 64 MiB VMEM even though it would fit v5e/v6e's 128 MiB.
    nbytes = lambda a: a.size * a.dtype.itemsize
    param_bytes = sum(nbytes(a) for a in flat_params)
    x_tile_bytes = tile_m * Din * x.dtype.itemsize
    o_tile_bytes = tile_m * dout_pad * jnp.dtype(out_dtype).itemsize
    act_bytes = 4 * chunk_rows * max(dout_pad, _round_up(Din, _LANE)) * 4
    footprint = 2 * (param_bytes + x_tile_bytes + o_tile_bytes) + act_bytes
    vmem_limit = int(min(max(2 * footprint, 16 << 20), 64 << 20))

    flops = 2 * b_pad * sum(wp.shape[0] * wp.shape[1] for wp, _ in prepared)
    bytes_accessed = (nbytes(xp) + param_bytes
                      + b_pad * dout_pad * jnp.dtype(out_dtype).itemsize)

    kernel = functools.partial(_fused_mlp_kernel, n_linear=n_linear,
                               chunk_rows=chunk_rows)
    out_pad = pl.pallas_call(
        kernel,
        out_shape=jax.ShapeDtypeStruct((b_pad, dout_pad), out_dtype),
        grid_spec=pl.GridSpec(grid=grid, in_specs=in_specs, out_specs=out_spec),
        compiler_params=pltpu.CompilerParams(
            dimension_semantics=("parallel",),     # batch tiles shard across TCs
            vmem_limit_bytes=vmem_limit,
        ),
        cost_estimate=pl.CostEstimate(flops=flops, transcendentals=0,
                                      bytes_accessed=bytes_accessed),
    )(xp, *flat_params)
    return out_pad[:B, :output_dim]


def init_mlp_params(key, n_layers, n_units, input_dim, output_dim):
    """Deterministic init matching the PyTorch module's layer shapes."""
    layer_dims = []
    in_features = input_dim
    for _ in range(n_layers):
        layer_dims.append((in_features, n_units))
        in_features = n_units
    layer_dims.append((in_features, output_dim))

    params = []
    for (din, dout) in layer_dims:
        key, kw, kb = jax.random.split(key, 3)
        bound = 1.0 / jnp.sqrt(din)
        w = jax.random.uniform(kw, (din, dout), jnp.float32, -bound, bound)
        b = jax.random.uniform(kb, (1, dout), jnp.float32, -bound, bound)
        params.append((w, b))
    return params


def mlp_reference(x, params):
    n_total = len(params)
    for i, (w, b) in enumerate(params):
        x = x @ w + b
        if i < n_total - 1:
            x = jnp.maximum(x, 0.0)
    return x


if __name__ == "__main__":
    key = jax.random.PRNGKey(0)
    # Shapes consistent with the original module's usage: x = torch.randn(1000, 100).
    batch, input_dim, n_units, output_dim, n_layers = 1000, 100, 64, 10, 2

    kx, kp = jax.random.split(key)
    x = jax.random.normal(kx, (batch, input_dim), jnp.float32)
    params = init_mlp_params(kp, n_layers, n_units, input_dim, output_dim)
    ref = mlp_reference(x, params)

    fwd = jax.jit(functools.partial(mlp_forward, output_dim=output_dim,
                                    tile_m=512, chunk_rows=256))

    # f32 MXU path: exact vs reference.
    prep_f32 = prepare_mlp_params(params, jnp.float32)
    out_f32 = jax.block_until_ready(fwd(x, prep_f32))
    assert out_f32.shape == (batch, output_dim)
    assert jnp.allclose(out_f32, ref, atol=1e-5, rtol=1e-5)

    # Default bf16 path: weights stored bf16 in HBM (pre-cast once), f32
    # accumulate + f32 bias/ReLU epilogue. Numerically identical to casting
    # the f32 weights to bf16 inside the kernel.
    prep_bf16 = prepare_mlp_params(params)          # bf16 by default
    out_bf16 = jax.block_until_ready(fwd(x, prep_bf16))
    assert out_bf16.shape == (batch, output_dim)
    assert jnp.allclose(out_bf16, ref, atol=1e-1, rtol=1e-1)

    print("KERNEL_OK")
</pallas_src>

<mosaic_0001>
module attributes {stable_mosaic.version = 11 : i64} {
  func.func @_fused_mlp_kernel(%arg0: i32, %arg1: memref<512x100xf32, #tpu.memory_space<vmem>>, %arg2: memref<100x128xf32, #tpu.memory_space<vmem>>, %arg3: memref<1x128xf32, #tpu.memory_space<vmem>>, %arg4: memref<128x128xf32, #tpu.memory_space<vmem>>, %arg5: memref<1x128xf32, #tpu.memory_space<vmem>>, %arg6: memref<128x128xf32, #tpu.memory_space<vmem>>, %arg7: memref<1x128xf32, #tpu.memory_space<vmem>>, %arg8: memref<512x128xf32, #tpu.memory_space<vmem>>) attributes {dimension_semantics = [#tpu.dimension_semantics<parallel>], iteration_bounds = array<i64: 2>, scalar_prefetch = 0 : i64, scratch_operands = 0 : i64, tpu.core_type = #tpu.core_type<tc>, window_params = [{transform_indices = @transform_0, window_bounds = array<i64: 512, 100>}, {pipeline_mode = #tpu.pipeline_mode<synchronous>, transform_indices = @transform_1, window_bounds = array<i64: 100, 128>}, {pipeline_mode = #tpu.pipeline_mode<synchronous>, transform_indices = @transform_2, window_bounds = array<i64: 1, 128>}, {pipeline_mode = #tpu.pipeline_mode<synchronous>, transform_indices = @transform_3, window_bounds = array<i64: 128, 128>}, {pipeline_mode = #tpu.pipeline_mode<synchronous>, transform_indices = @transform_4, window_bounds = array<i64: 1, 128>}, {pipeline_mode = #tpu.pipeline_mode<synchronous>, transform_indices = @transform_5, window_bounds = array<i64: 128, 128>}, {pipeline_mode = #tpu.pipeline_mode<synchronous>, transform_indices = @transform_6, window_bounds = array<i64: 1, 128>}, {transform_indices = @transform_7, window_bounds = array<i64: 512, 128>}]} {
    %c0_i32 = arith.constant 0 : i32
    %c256_i32 = arith.constant 256 : i32
    %0 = arith.muli %c0_i32, %c256_i32 : i32
    %1 = tpu.assume_multiple %0, 8 : i32
    %2 = arith.index_cast %1 : i32 to index
    %c0 = arith.constant 0 : index
    %3 = vector.load %arg1[%2, %c0] : memref<512x100xf32, #tpu.memory_space<vmem>>, vector<256x100xf32>
    %c0_0 = arith.constant 0 : index
    %c0_1 = arith.constant 0 : index
    %4 = vector.load %arg2[%c0_0, %c0_1] : memref<100x128xf32, #tpu.memory_space<vmem>>, vector<100x128xf32>
    %cst = arith.constant dense<0.000000e+00> : vector<256x128xf32>
    %5 = tpu.matmul %3, %4, %cst {dimension_numbers = #tpu.dot_dimension_numbers<[1], [0], [0], [1], [0, 0, 1, 1], [], []>} : vector<256x100xf32>, vector<100x128xf32>, vector<256x128xf32> -> vector<256x128xf32>
    %c0_2 = arith.constant 0 : index
    %c0_3 = arith.constant 0 : index
    %6 = vector.load %arg3[%c0_2, %c0_3] : memref<1x128xf32, #tpu.memory_space<vmem>>, vector<1x128xf32>
    %7 = vector.broadcast %6 : vector<1x128xf32> to vector<256x128xf32>
    %8 = arith.addf %5, %7 : vector<256x128xf32>
    %cst_4 = arith.constant 0.000000e+00 : f32
    %9 = vector.broadcast %cst_4 : f32 to vector<256x128xf32>
    %10 = arith.maximumf %8, %9 : vector<256x128xf32>
    %c0_5 = arith.constant 0 : index
    %c0_6 = arith.constant 0 : index
    %11 = vector.load %arg4[%c0_5, %c0_6] : memref<128x128xf32, #tpu.memory_space<vmem>>, vector<128x128xf32>
    %cst_7 = arith.constant dense<0.000000e+00> : vector<256x128xf32>
    %12 = tpu.matmul %10, %11, %cst_7 {dimension_numbers = #tpu.dot_dimension_numbers<[1], [0], [0], [1], [0, 0, 1, 1], [], []>} : vector<256x128xf32>, vector<128x128xf32>, vector<256x128xf32> -> vector<256x128xf32>
    %c0_8 = arith.constant 0 : index
    %c0_9 = arith.constant 0 : index
    %13 = vector.load %arg5[%c0_8, %c0_9] : memref<1x128xf32, #tpu.memory_space<vmem>>, vector<1x128xf32>
    %14 = vector.broadcast %13 : vector<1x128xf32> to vector<256x128xf32>
    %15 = arith.addf %12, %14 : vector<256x128xf32>
    %cst_10 = arith.constant 0.000000e+00 : f32
    %16 = vector.broadcast %cst_10 : f32 to vector<256x128xf32>
    %17 = arith.maximumf %15, %16 : vector<256x128xf32>
    %c0_11 = arith.constant 0 : index
    %c0_12 = arith.constant 0 : index
    %18 = vector.load %arg6[%c0_11, %c0_12] : memref<128x128xf32, #tpu.memory_space<vmem>>, vector<128x128xf32>
    %cst_13 = arith.constant dense<0.000000e+00> : vector<256x128xf32>
    %19 = tpu.matmul %17, %18, %cst_13 {dimension_numbers = #tpu.dot_dimension_numbers<[1], [0], [0], [1], [0, 0, 1, 1], [], []>} : vector<256x128xf32>, vector<128x128xf32>, vector<256x128xf32> -> vector<256x128xf32>
    %c0_14 = arith.constant 0 : index
    %c0_15 = arith.constant 0 : index
    %20 = vector.load %arg7[%c0_14, %c0_15] : memref<1x128xf32, #tpu.memory_space<vmem>>, vector<1x128xf32>
    %21 = vector.broadcast %20 : vector<1x128xf32> to vector<256x128xf32>
    %22 = arith.addf %19, %21 : vector<256x128xf32>
    %23 = arith.index_cast %1 : i32 to index
    %c0_16 = arith.constant 0 : index
    %24 = vector.load %arg8[%23, %c0_16] : memref<512x128xf32, #tpu.memory_space<vmem>>, vector<256x128xf32>
    tpu.vector_store %arg8[%23, %c0_16], %22 {strides = array<i32>} : memref<512x128xf32, #tpu.memory_space<vmem>>, vector<256x128xf32>,
    %c1_i32 = arith.constant 1 : i32
    %c256_i32_17 = arith.constant 256 : i32
    %25 = arith.muli %c1_i32, %c256_i32_17 : i32
    %26 = tpu.assume_multiple %25, 8 : i32
    %27 = arith.index_cast %26 : i32 to index
    %c0_18 = arith.constant 0 : index
    %28 = vector.load %arg1[%27, %c0_18] : memref<512x100xf32, #tpu.memory_space<vmem>>, vector<256x100xf32>
    %c0_19 = arith.constant 0 : index
    %c0_20 = arith.constant 0 : index
    %29 = vector.load %arg2[%c0_19, %c0_20] : memref<100x128xf32, #tpu.memory_space<vmem>>, vector<100x128xf32>
    %cst_21 = arith.constant dense<0.000000e+00> : vector<256x128xf32>
    %30 = tpu.matmul %28, %29, %cst_21 {dimension_numbers = #tpu.dot_dimension_numbers<[1], [0], [0], [1], [0, 0, 1, 1], [], []>} : vector<256x100xf32>, vector<100x128xf32>, vector<256x128xf32> -> vector<256x128xf32>
    %c0_22 = arith.constant 0 : index
    %c0_23 = arith.constant 0 : index
    %31 = vector.load %arg3[%c0_22, %c0_23] : memref<1x128xf32, #tpu.memory_space<vmem>>, vector<1x128xf32>
    %32 = vector.broadcast %31 : vector<1x128xf32> to vector<256x128xf32>
    %33 = arith.addf %30, %32 : vector<256x128xf32>
    %cst_24 = arith.constant 0.000000e+00 : f32
    %34 = vector.broadcast %cst_24 : f32 to vector<256x128xf32>
    %35 = arith.maximumf %33, %34 : vector<256x128xf32>
    %c0_25 = arith.constant 0 : index
    %c0_26 = arith.constant 0 : index
    %36 = vector.load %arg4[%c0_25, %c0_26] : memref<128x128xf32, #tpu.memory_space<vmem>>, vector<128x128xf32>
    %cst_27 = arith.constant dense<0.000000e+00> : vector<256x128xf32>
    %37 = tpu.matmul %35, %36, %cst_27 {dimension_numbers = #tpu.dot_dimension_numbers<[1], [0], [0], [1], [0, 0, 1, 1], [], []>} : vector<256x128xf32>, vector<128x128xf32>, vector<256x128xf32> -> vector<256x128xf32>
    %c0_28 = arith.constant 0 : index
    %c0_29 = arith.constant 0 : index
    %38 = vector.load %arg5[%c0_28, %c0_29] : memref<1x128xf32, #tpu.memory_space<vmem>>, vector<1x128xf32>
    %39 = vector.broadcast %38 : vector<1x128xf32> to vector<256x128xf32>
    %40 = arith.addf %37, %39 : vector<256x128xf32>
    %cst_30 = arith.constant 0.000000e+00 : f32
    %41 = vector.broadcast %cst_30 : f32 to vector<256x128xf32>
    %42 = arith.maximumf %40, %41 : vector<256x128xf32>
    %c0_31 = arith.constant 0 : index
    %c0_32 = arith.constant 0 : index
    %43 = vector.load %arg6[%c0_31, %c0_32] : memref<128x128xf32, #tpu.memory_space<vmem>>, vector<128x128xf32>
    %cst_33 = arith.constant dense<0.000000e+00> : vector<256x128xf32>
    %44 = tpu.matmul %42, %43, %cst_33 {dimension_numbers = #tpu.dot_dimension_numbers<[1], [0], [0], [1], [0, 0, 1, 1], [], []>} : vector<256x128xf32>, vector<128x128xf32>, vector<256x128xf32> -> vector<256x128xf32>
    %c0_34 = arith.constant 0 : index
    %c0_35 = arith.constant 0 : index
    %45 = vector.load %arg7[%c0_34, %c0_35] : memref<1x128xf32, #tpu.memory_space<vmem>>, vector<1x128xf32>
    %46 = vector.broadcast %45 : vector<1x128xf32> to vector<256x128xf32>
    %47 = arith.addf %44, %46 : vector<256x128xf32>
    %48 = arith.index_cast %26 : i32 to index
    %c0_36 = arith.constant 0 : index
    %49 = vector.load %arg8[%48, %c0_36] : memref<512x128xf32, #tpu.memory_space<vmem>>, vector<256x128xf32>
    tpu.vector_store %arg8[%48, %c0_36], %47 {strides = array<i32>} : memref<512x128xf32, #tpu.memory_space<vmem>>, vector<256x128xf32>,
    %c2_i32 = arith.constant 2 : i32
    return
  }
  func.func @transform_0(%arg0: i32) -> (i32, i32) {
    %c0_i32 = arith.constant 0 : i32
    %c0_i32_0 = arith.constant 0 : i32
    return %arg0, %c0_i32 : i32, i32
  }
  func.func @transform_1(%arg0: i32) -> (i32, i32) {
    %c0_i32 = arith.constant 0 : i32
    %c0_i32_0 = arith.constant 0 : i32
    %c0_i32_1 = arith.constant 0 : i32
    return %c0_i32, %c0_i32_0 : i32, i32
  }
  func.func @transform_2(%arg0: i32) -> (i32, i32) {
    %c0_i32 = arith.constant 0 : i32
    %c0_i32_0 = arith.constant 0 : i32
    %c0_i32_1 = arith.constant 0 : i32
    return %c0_i32, %c0_i32_0 : i32, i32
  }
  func.func @transform_3(%arg0: i32) -> (i32, i32) {
    %c0_i32 = arith.constant 0 : i32
    %c0_i32_0 = arith.constant 0 : i32
    %c0_i32_1 = arith.constant 0 : i32
    return %c0_i32, %c0_i32_0 : i32, i32
  }
  func.func @transform_4(%arg0: i32) -> (i32, i32) {
    %c0_i32 = arith.constant 0 : i32
    %c0_i32_0 = arith.constant 0 : i32
    %c0_i32_1 = arith.constant 0 : i32
    return %c0_i32, %c0_i32_0 : i32, i32
  }
  func.func @transform_5(%arg0: i32) -> (i32, i32) {
    %c0_i32 = arith.constant 0 : i32
    %c0_i32_0 = arith.constant 0 : i32
    %c0_i32_1 = arith.constant 0 : i32
    return %c0_i32, %c0_i32_0 : i32, i32
  }
  func.func @transform_6(%arg0: i32) -> (i32, i32) {
    %c0_i32 = arith.constant 0 : i32
    %c0_i32_0 = arith.constant 0 : i32
    %c0_i32_1 = arith.constant 0 : i32
    return %c0_i32, %c0_i32_0 : i32, i32
  }
  func.func @transform_7(%arg0: i32) -> (i32, i32) {
    %c0_i32 = arith.constant 0 : i32
    %c0_i32_0 = arith.constant 0 : i32
    return %arg0, %c0_i32 : i32, i32
  }
}

</mosaic_0001>

<bundles_post_ra>
// kernel: mlp_forward.1
= control target key start
LH: loop header
LB: loop body
LE: loop exit
PB: predicated region body
PF: predicated region fallthrough
CT: control target
= control target key end

     0   :  { %s3232_s24 = smov 0   ;;  %s4064_s0 = inlined_call_operand.vmem [shape: f32[1024,100], index: 0, kind: input, shape index: {}]   ;;  %s4065_s1 = inlined_call_operand.vmem [shape: f32[100,128], index: 1, kind: input, shape index: {}]   ;;  %s4066_s2 = inlined_call_operand.vmem [shape: f32[1,128], index: 2, kind: input, shape index: {}]   ;;  %s4067_s3 = inlined_call_operand.vmem [shape: f32[128,128], index: 3, kind: input, shape index: {}]   ;;  %s4068_s4 = inlined_call_operand.vmem [shape: f32[1,128], index: 4, kind: input, shape index: {}]   ;;  %s4069_s5 = inlined_call_operand.vmem [shape: f32[128,128], index: 5, kind: input, shape index: {}]   ;;  %s4070_s6 = inlined_call_operand.vmem [shape: f32[1,128], index: 6, kind: input, shape index: {}]   ;;  %s4071_s7 = inlined_call_operand.vmem [shape: f32[1024,128], index: 7, kind: output, shape index: {}]  }
   0x1 LB: > { %s2278_s25 = sadd.s32 4294967295, %s3190_s24   ;;  %p2282_p0 = scmp.ge.s32.totalorder %s3190_s24, 1  ;;  %s3190_s24 = sphi %s3232_s24, %s17_s24  }
   0x2   : > { %p238_p1 = scmp.lt.s32.totalorder %s3190_s24, 3 }
   0x4   : > { %p239_p2 = pnand %p2282_p0, %p238_p1 }
   0x5   : > { %s2283_s30 = sshll.u32 (!%p239_p2), %s2278_s25, 6 }
   0x6   : > { %242 = sbr.rel (%p239_p2) target bundleno = 960 (0x3c0), region = 48  ;;  %p271_p3 = scmp.lt.s32.totalorder (!%p239_p2), %s2283_s30, 127 }
   0xb   : > { %v326_v0 = vld [vmem:[%s4065_s1 + $0x60] sm:$0xf]  ;;  %vm431_vm0 = vcmask 1043456   ;;  %v3246_v1 = vld [vmem:[%s4065_s1 + $0x58] sm:$0xff]  ;;  %v3253_v2 = vld [vmem:[%s4065_s1 + $0x50] sm:$0xff]  ;;  %s4073_s30 = smov (!%p271_p3, %s2283_s30), 127 }
   0xc   : > { %2707 = vmatprep.subr.msk.mxu0 %vm431_vm0, %v326_v0  ;;  %v3262_v3 = vld [vmem:[%s4065_s1 + $0x48] sm:$0xff]  ;;  %v3267_v4 = vld [vmem:[%s4067_s3 + $0x78] sm:$0xff]  ;;  %v3272_v5 = vld [vmem:[%s4067_s3 + $0x70] sm:$0xff]  ;;  %s2284_s16 = sshll.u32 %s4073_s30, 3  ;;  %vm334_vm1 = vcmask 818176  }
   0xd   : > { %2708 = vmatpush3.msk.msra.mxu0 %vm431_vm0, %v326_v0  ;;  %2781 = vmatprep.subr.mxu1 %v3267_v4  ;;  %v3281_v6 = vld [vmem:[%s4065_s1 + $0x40] sm:$0xff]  ;;  %s3288_s21 = scalar_lea.vmem %s4064_s0, %s2284_s16  ;;  %v3297_v8 = vld [vmem:[%s4067_s3 + $0x68] sm:$0xff]  ;;  %v3303_v9 = vld [vmem:[%s4065_s1 + $0x38] sm:$0xff]  ;;  %s3899_s12 = scalar_lea.vmem %s4071_s7, %s2284_s16 }
   0xe   : > { %2709 = vmatprep.subr.mxu0 %v3246_v1  ;;  %2782 = vmatpush3.msra.mxu1 %v3267_v4  ;;  %v282_v7 = vld [vmem:[%s3288_s21] sm:$0xff]  ;;  %v3317_v11 = vld [vmem:[%s4065_s1 + $0x30] sm:$0xff]  ;;  %v3325_v12 = vld [vmem:[%s4067_s3 + $0x58] sm:$0xff] }
   0xf   : > { %2710 = vmatpush3.msra.mxu0 %v3246_v1  ;;  %2783 = vmatprep.subr.mxu1 %v3272_v5  ;;  %v3311_v10 = vld [vmem:[%s4067_s3 + $0x60] sm:$0xff]  ;;  %v3331_v13 = vld [vmem:[%s4065_s1 + $0x28] sm:$0xff]  ;;  %v3339_v14 = vld [vmem:[%s4067_s3 + $0x50] sm:$0xff] }
  0x10   : > { %2711 = vmatprep.subr.mxu0 %v3253_v2  ;;  %2733 = vmatprep.mubr.msk.f32.mxu0 %vm334_vm1, %v282_v7  ;;  %v3345_v15 = vld [vmem:[%s4065_s1 + $0x20] sm:$0xff]  ;;  %v3353_v16 = vld [vmem:[%s4067_s3 + $0x48] sm:$0xff]  ;;  %v3359_v17 = vld [vmem:[%s4065_s1 + $0x18] sm:$0xff] }
  0x11   : > { %2712 = vmatpush3.msra.mxu0 %v3253_v2  ;;  %2784 = vmatpush3.msra.mxu1 %v3272_v5  ;;  %v3367_v18 = vld [vmem:[%s4067_s3 + $0x40] sm:$0xff]  ;;  %v3373_v19 = vld [vmem:[%s4065_s1 + $0x10] sm:$0xff]  ;;  %v3381_v20 = vld [vmem:[%s4067_s3 + $0x38] sm:$0xff] }
  0x12   : > { %2713 = vmatprep.subr.mxu0 %v3262_v3  ;;  %2785 = vmatprep.subr.mxu1 %v3297_v8  ;;  %v3387_v21 = vld [vmem:[%s4065_s1 + $0x8] sm:$0xff]  ;;  %v3395_v22 = vld [vmem:[%s4067_s3 + $0x30] sm:$0xff]  ;;  %v3401_v23 = vld [vmem:[%s4065_s1] sm:$0xff] }
  0x13   : > { %2714 = vmatpush3.msra.mxu0 %v3262_v3  ;;  %2786 = vmatpush3.msra.mxu1 %v3297_v8  ;;  %v3409_v24 = vld [vmem:[%s4067_s3 + $0x28] sm:$0xff]  ;;  %v284_v26 = vld [vmem:[%s3288_s21 + $0x10] sm:$0xff]  ;;  %v3420_v27 = vld [vmem:[%s4067_s3 + $0x20] sm:$0xff] }
  0x14   : > { %2715 = vmatprep.subr.mxu0 %v3281_v6  ;;  %2787 = vmatprep.subr.mxu1 %v3311_v10  ;;  %v283_v25 = vld [vmem:[%s3288_s21 + $0x8] sm:$0xff]  ;;  %v3429_v28 = vld [vmem:[%s4067_s3 + $0x18] sm:$0xff]  ;;  %v286_v30 = vld [vmem:[%s3288_s21 + $0x20] sm:$0xff] }
  0x15   : > { %2716 = vmatpush3.msra.mxu0 %v3281_v6  ;;  %2788 = vmatpush3.msra.mxu1 %v3311_v10  ;;  %v285_v29 = vld [vmem:[%s3288_s21 + $0x18] sm:$0xff]  ;;  %v287_v31 = vld [vmem:[%s3288_s21 + $0x28] sm:$0xff]  ;;  %v288_v32 = vld [vmem:[%s3288_s21 + $0x30] sm:$0xff] }
  0x16   : > { %2717 = vmatprep.subr.mxu0 %v3303_v9  ;;  %2789 = vmatprep.subr.mxu1 %v3325_v12  ;;  %v289_v33 = vld [vmem:[%s3288_s21 + $0x38] sm:$0xff]  ;;  %v290_v34 = vld [vmem:[%s3288_s21 + $0x40] sm:$0xff]  ;;  %v291_v35 = vld [vmem:[%s3288_s21 + $0x48] sm:$0xff] }
  0x17   : > { %2718 = vmatpush3.msra.mxu0 %v3303_v9  ;;  %2790 = vmatpush3.msra.mxu1 %v3325_v12  ;;  %v292_v36 = vld [vmem:[%s3288_s21 + $0x50] sm:$0xff]  ;;  %v293_v37 = vld [vmem:[%s3288_s21 + $0x58] sm:$0xff]  ;;  %v294_v38 = vld [vmem:[%s3288_s21 + $0x60] sm:$0xff] }
  0x18   : > { %2719 = vmatprep.subr.mxu0 %v3317_v11  ;;  %2791 = vmatprep.subr.mxu1 %v3339_v14  ;;  %v295_v39 = vld [vmem:[%s3288_s21 + $0x68] sm:$0xff]  ;;  %v296_v40 = vld [vmem:[%s3288_s21 + $0x70] sm:$0xff]  ;;  %v297_v41 = vld [vmem:[%s3288_s21 + $0x78] sm:$0xff] }
  0x19   : > { %2720 = vmatpush3.msra.mxu0 %v3317_v11  ;;  %2792 = vmatpush3.msra.mxu1 %v3339_v14  ;;  %v298_v42 = vld [vmem:[%s3288_s21 + $0x80] sm:$0xff]  ;;  %v299_v43 = vld [vmem:[%s3288_s21 + $0x88] sm:$0xff]  ;;  %v300_v44 = vld [vmem:[%s3288_s21 + $0x90] sm:$0xff] }
  0x1a   : > { %2721 = vmatprep.subr.mxu0 %v3331_v13  ;;  %2793 = vmatprep.subr.mxu1 %v3353_v16  ;;  %v301_v45 = vld [vmem:[%s3288_s21 + $0x98] sm:$0xff]  ;;  %v302_v46 = vld [vmem:[%s3288_s21 + $0xa0] sm:$0xff]  ;;  %v303_v47 = vld [vmem:[%s3288_s21 + $0xa8] sm:$0xff] }
  0x1b   : > { %2722 = vmatpush3.msra.mxu0 %v3331_v13  ;;  %2794 = vmatpush3.msra.mxu1 %v3353_v16  ;;  %v304_v48 = vld [vmem:[%s3288_s21 + $0xb0] sm:$0xff]  ;;  %v305_v49 = vld [vmem:[%s3288_s21 + $0xb8] sm:$0xff]  ;;  %v306_v50 = vld [vmem:[%s3288_s21 + $0xc0] sm:$0xff] }
  0x1c   : > { %2723 = vmatprep.subr.mxu0 %v3345_v15  ;;  %2795 = vmatprep.subr.mxu1 %v3367_v18  ;;  %v307_v51 = vld [vmem:[%s3288_s21 + $0xc8] sm:$0xff]  ;;  %v308_v52 = vld [vmem:[%s3288_s21 + $0xd0] sm:$0xff]  ;;  %v309_v53 = vld [vmem:[%s3288_s21 + $0xd8] sm:$0xff] }
  0x1d   : > { %2724 = vmatpush3.msra.mxu0 %v3345_v15  ;;  %2796 = vmatpush3.msra.mxu1 %v3367_v18  ;;  %v310_v54 = vld [vmem:[%s3288_s21 + $0xe0] sm:$0xff]  ;;  %v311_v55 = vld [vmem:[%s3288_s21 + $0xe8] sm:$0xff]  ;;  %v312_v56 = vld [vmem:[%s3288_s21 + $0xf0] sm:$0xff] }
  0x1e   : > { %2725 = vmatprep.subr.mxu0 %v3359_v17  ;;  %2797 = vmatprep.subr.mxu1 %v3381_v20  ;;  %v313_v57 = vld [vmem:[%s3288_s21 + $0xf8] sm:$0xff]  ;;  %v3497_v58 = vld [vmem:[%s4067_s3 + $0x10] sm:$0xff]  ;;  %v3504_v59 = vld [vmem:[%s4067_s3 + $0x8] sm:$0xff] }
  0x1f   : > { %2726 = vmatpush3.msra.mxu0 %v3359_v17  ;;  %2798 = vmatpush3.msra.mxu1 %v3381_v20  ;;  %v3511_v60 = vld [vmem:[%s4067_s3] sm:$0xff] }
  0x20   : > { %2727 = vmatprep.subr.mxu0 %v3373_v19  ;;  %2799 = vmatprep.subr.mxu1 %v3395_v22  ;;  %v1297_v61 = vld [vmem:[%s4065_s1 + $0x60] sm:$0xf] }
  0x21   : > { %2728 = vmatpush3.msra.mxu0 %v3373_v19  ;;  %2800 = vmatpush3.msra.mxu1 %v3395_v22  ;;  %v3522_v62 = vld [vmem:[%s4066_s2] ss:$0 sm:$0xff] }
  0x22   : > { %2729 = vmatprep.subr.mxu0 %v3387_v21  ;;  %2801 = vmatprep.subr.mxu1 %v3409_v24 }
  0x23   : > { %2730 = vmatpush3.msra.mxu0 %v3387_v21  ;;  %2802 = vmatpush3.msra.mxu1 %v3409_v24 }
  0x24   : > { %2731 = vmatprep.subr.mxu0 %v3401_v23  ;;  %2803 = vmatprep.subr.mxu1 %v3420_v27 }
  0x25   : > { %2732 = vmatpush3.msra.mxu0 %v3401_v23  ;;  %2804 = vmatpush3.msra.mxu1 %v3420_v27 }
  0x26   : > { %2734 = vmatmul.mubr.msk.f32.vlgmr.msra.gmra.mxu0 %vm334_vm1, %v283_v25  ;;  %2805 = vmatprep.subr.mxu1 %v3429_v28 }
  0x27   : > { %2736 = vmatprep.mubr.msk.f32.mxu0 %vm334_vm1, %v284_v26  ;;  %2806 = vmatpush3.msra.mxu1 %v3429_v28 }
  0x28   : > { %2807 = vmatprep.subr.mxu1 %v3497_v58 }
  0x29   : > { %2808 = vmatpush3.msra.mxu1 %v3497_v58 }
  0x2a   : > { %2737 = vmatmul.mubr.msk.f32.gmra.mxu0 %vm334_vm1, %v285_v29  ;;  %2809 = vmatprep.subr.mxu1 %v3504_v59  ;;  %v3529_v29 = vld [vmem:[%s4069_s5 + $0x78] sm:$0xff] }
  0x2b   : > { %2739 = vmatprep.mubr.msk.f32.mxu0 %vm334_vm1, %v286_v30  ;;  %2810 = vmatpush3.msra.mxu1 %v3504_v59  ;;  %v3534_v30 = vld [vmem:[%s4069_s5 + $0x70] sm:$0xff] }
  0x2c   : > { %2811 = vmatprep.subr.mxu1 %v3511_v60  ;;  %2861 = vmatprep.subr.mxu0 %v3529_v29 }
  0x2d   : > { %2812 = vmatpush3.msra.mxu1 %v3511_v60  ;;  %2862 = vmatpush3.msra.mxu0 %v3529_v29 }
  0x2e   : > { %2740 = vmatmul.mubr.msk.f32.gmra.mxu0 %vm334_vm1, %v287_v31  ;;  %2941 = vmatprep.subr.msk.mxu1 %vm431_vm0, %v1297_v61 }
  0x2f   : > { %2742 = vmatprep.mubr.msk.f32.mxu0 %vm334_vm1, %v288_v32  ;;  %2863 = vmatprep.subr.mxu0 %v3534_v30 }
  0x30   : > { %2864 = vmatpush3.msra.mxu0 %v3534_v30 }
  0x32   : > { %2743 = vmatmul.mubr.msk.f32.gmra.mxu0 %vm334_vm1, %v289_v33 }
  0x33   : > { %2745 = vmatprep.mubr.msk.f32.mxu0 %vm334_vm1, %v290_v34 }
  0x36   : > { %2746 = vmatmul.mubr.msk.f32.gmra.mxu0 %vm334_vm1, %v291_v35  ;;  %v3542_v35 = vld [vmem:[%s4069_s5 + $0x68] sm:$0xff] }
  0x37   : > { %2748 = vmatprep.mubr.msk.f32.mxu0 %vm334_vm1, %v292_v36  ;;  %2865 = vmatprep.subr.mxu0 %v3542_v35 }
  0x38   : > { %2866 = vmatpush3.msra.mxu0 %v3542_v35 }
  0x3a   : > { %2749 = vmatmul.mubr.msk.f32.gmra.mxu0 %vm334_vm1, %v293_v37 }
  0x3b   : > { %2751 = vmatprep.mubr.msk.f32.mxu0 %vm334_vm1, %v294_v38 }
  0x3e   : > { %2752 = vmatmul.mubr.msk.f32.gmra.mxu0 %vm334_vm1, %v295_v39 }
  0x3f   : > { %2754 = vmatprep.mubr.msk.f32.mxu0 %vm334_vm1, %v296_v40 }
  0x42   : > { %2755 = vmatmul.mubr.msk.f32.gmra.mxu0 %vm334_vm1, %v297_v41 }
  0x43   : > { %2757 = vmatprep.mubr.msk.f32.mxu0 %vm334_vm1, %v298_v42  ;;  %v3555_v42 = vld [vmem:[%s4069_s5 + $0x60] sm:$0xff] }
  0x44   : > { %2867 = vmatprep.subr.mxu0 %v3555_v42 }
  0x45   : > { %2868 = vmatpush3.msra.mxu0 %v3555_v42 }
  0x46   : > { %2758 = vmatmul.mubr.msk.f32.gmra.mxu0 %vm334_vm1, %v299_v43 }
  0x47   : > { %2760 = vmatprep.mubr.msk.f32.mxu0 %vm334_vm1, %v300_v44 }
  0x4a   : > { %2761 = vmatmul.mubr.msk.f32.gmra.mxu0 %vm334_vm1, %v301_v45 }
  0x4b   : > { %2763 = vmatprep.mubr.msk.f32.mxu0 %vm334_vm1, %v302_v46 }
  0x4e   : > { %2764 = vmatmul.mubr.msk.f32.gmra.mxu0 %vm334_vm1, %v303_v47 }
  0x4f   : > { %2766 = vmatprep.mubr.msk.f32.mxu0 %vm334_vm1, %v304_v48 }
  0x52   : > { %2767 = vmatmul.mubr.msk.f32.gmra.mxu0 %vm334_vm1, %v305_v49 }
  0x53   : > { %2769 = vmatprep.mubr.msk.f32.mxu0 %vm334_vm1, %v306_v50 }
  0x56   : > { %2770 = vmatmul.mubr.msk.f32.gmra.mxu0 %vm334_vm1, %v307_v51 }
  0x57   : > { %2772 = vmatprep.mubr.msk.f32.mxu0 %vm334_vm1, %v308_v52 }
  0x5a   : > { %2773 = vmatmul.mubr.msk.f32.gmra.mxu0 %vm334_vm1, %v309_v53 }
  0x5b   : > { %2775 = vmatprep.mubr.msk.f32.mxu0 %vm334_vm1, %v310_v54 }
  0x5e   : > { %2776 = vmatmul.mubr.msk.f32.gmra.mxu0 %vm334_vm1, %v311_v55 }
  0x5f   : > { %2778 = vmatprep.mubr.msk.f32.mxu0 %vm334_vm1, %v312_v56 }
  0x62   : > { %2779 = vmatmul.mubr.msk.f32.gmra.mxu0 %vm334_vm1, %v313_v57 }
  0xe6   : > { %v2735_v63 = vpop.f32.mrf.mxu0 }
  0xe7   : > { %v507_v0 = vadd.f32 %v2735_v63, %v3522_v62 }
  0xe8   : > { %v501_v7 = vpop.f32.mrf.mxu0 }
  0xe9   : > { %v502_v25 = vadd.f32 %v3522_v62, %v501_v7  ;;  %v661_v32 = vmax.f32 %v507_v0, 0.0 }
  0xea   : > { %v2738_v26 = vpop.f32.mrf.mxu0 }
  0xeb   : > { %v660_v31 = vmax.f32 %v502_v25, 0.0  ;;  %v517_v33 = vadd.f32 %v2738_v26, %v3522_v62 }
  0xec   : > { %v511_v34 = vpop.f32.mrf.mxu0 }
  0xed   : > { %v512_v36 = vadd.f32 %v3522_v62, %v511_v34  ;;  %2813 = vmatprep.mubr.f32.mxu1 %v660_v31  ;;  %v663_v39 = vmax.f32 %v517_v33, 0.0 }
  0xee   : > { %v2741_v37 = vpop.f32.mrf.mxu0  ;;  %2814 = vmatmul.mubr.f32.vlgmr.msra.gmra.mxu1 %v661_v32 }
  0xef   : > { %v662_v38 = vmax.f32 %v512_v36, 0.0  ;;  %2942 = vmatpush3.msk.msra.mxu1 %vm431_vm0, %v1297_v61  ;;  %v527_v40 = vadd.f32 %v2741_v37, %v3522_v62 }
  0xf0   : > { %v521_v41 = vpop.f32.mrf.mxu0  ;;  %2943 = vmatprep.subr.mxu1 %v3246_v1 }
  0xf1   : > { %v522_v43 = vadd.f32 %v3522_v62, %v521_v41  ;;  %2816 = vmatprep.mubr.f32.mxu1 %v662_v38  ;;  %2944 = vmatpush3.msra.mxu1 %v3246_v1  ;;  %v665_v46 = vmax.f32 %v527_v40, 0.0  ;;  %v3568_v1 = vld [vmem:[%s4069_s5 + $0x58] sm:$0xff]  ;;  %v3628_v38 = vld [vmem:[%s4069_s5 + $0x30] sm:$0xff] }
  0xf2   : > { %v2744_v44 = vpop.f32.mrf.mxu0  ;;  %2817 = vmatmul.mubr.f32.gmra.mxu1 %v663_v39  ;;  %2945 = vmatprep.subr.mxu1 %v3253_v2 }
  0xf3   : > { %v664_v45 = vmax.f32 %v522_v43, 0.0  ;;  %2946 = vmatpush3.msra.mxu1 %v3253_v2  ;;  %v537_v47 = vadd.f32 %v2744_v44, %v3522_v62  ;;  %2869 = vmatprep.subr.mxu0 %v3568_v1 }
  0xf4   : > { %v531_v48 = vpop.f32.mrf.mxu0  ;;  %2947 = vmatprep.subr.mxu1 %v3262_v3  ;;  %2870 = vmatpush3.msra.mxu0 %v3568_v1 }
  0xf5   : > { %v532_v49 = vadd.f32 %v3522_v62, %v531_v48  ;;  %2819 = vmatprep.mubr.f32.mxu1 %v664_v45  ;;  %2948 = vmatpush3.msra.mxu1 %v3262_v3  ;;  %v667_v51 = vmax.f32 %v537_v47, 0.0  ;;  %v3581_v3 = vld [vmem:[%s4069_s5 + $0x50] sm:$0xff]  ;;  %v3646_v45 = vld [vmem:[%s4069_s5 + $0x20] sm:$0xff] }
  0xf6   : > { %v2747_v2 = vpop.f32.mrf.mxu0  ;;  %2820 = vmatmul.mubr.f32.gmra.mxu1 %v665_v46  ;;  %2949 = vmatprep.subr.mxu1 %v3281_v6 }
  0xf7   : > { %v666_v50 = vmax.f32 %v532_v49, 0.0  ;;  %2950 = vmatpush3.msra.mxu1 %v3281_v6  ;;  %v547_v52 = vadd.f32 %v2747_v2, %v3522_v62  ;;  %2871 = vmatprep.subr.mxu0 %v3581_v3  ;;  %v3654_v2 = vld [vmem:[%s4069_s5 + $0x18] sm:$0xff] }
  0xf8   : > { %v541_v53 = vpop.f32.mrf.mxu0  ;;  %2951 = vmatprep.subr.mxu1 %v3303_v9  ;;  %2872 = vmatpush3.msra.mxu0 %v3581_v3 }
  0xf9   : > { %v542_v54 = vadd.f32 %v3522_v62, %v541_v53  ;;  %2822 = vmatprep.mubr.f32.mxu1 %v666_v50  ;;  %2952 = vmatpush3.msra.mxu1 %v3303_v9  ;;  %v669_v56 = vmax.f32 %v547_v52, 0.0  ;;  %v3594_v9 = vld [vmem:[%s4069_s5 + $0x48] sm:$0xff]  ;;  %v3662_v52 = vld [vmem:[%s4069_s5 + $0x10] sm:$0xff] }
  0xfa   : > { %v2750_v6 = vpop.f32.mrf.mxu0  ;;  %2823 = vmatmul.mubr.f32.gmra.mxu1 %v667_v51  ;;  %2953 = vmatprep.subr.mxu1 %v3317_v11 }
  0xfb   : > { %v668_v55 = vmax.f32 %v542_v54, 0.0  ;;  %2954 = vmatpush3.msra.mxu1 %v3317_v11  ;;  %v557_v57 = vadd.f32 %v2750_v6, %v3522_v62  ;;  %2873 = vmatprep.subr.mxu0 %v3594_v9 }
  0xfc   : > { %v551_v61 = vpop.f32.mrf.mxu0  ;;  %2955 = vmatprep.subr.mxu1 %v3331_v13  ;;  %2874 = vmatpush3.msra.mxu0 %v3594_v9 }
  0xfd   : > { %v552_v63 = vadd.f32 %v3522_v62, %v551_v61  ;;  %2825 = vmatprep.mubr.f32.mxu1 %v668_v55  ;;  %2956 = vmatpush3.msra.mxu1 %v3331_v13  ;;  %v671_v7 = vmax.f32 %v557_v57, 0.0  ;;  %v3607_v13 = vld [vmem:[%s4069_s5 + $0x40] sm:$0xff] }
  0xfe   : > { %v2753_v11 = vpop.f32.mrf.mxu0  ;;  %2826 = vmatmul.mubr.f32.gmra.mxu1 %v669_v56  ;;  %2957 = vmatprep.subr.mxu1 %v3345_v15  ;;  %v3670_v56 = vld [vmem:[%s4069_s5 + $0x8] sm:$0xff] }
  0xff   : > { %v670_v0 = vmax.f32 %v552_v63, 0.0  ;;  %2958 = vmatpush3.msra.mxu1 %v3345_v15  ;;  %v567_v25 = vadd.f32 %v2753_v11, %v3522_v62  ;;  %2875 = vmatprep.subr.mxu0 %v3607_v13 }
 0x100   : > { %v561_v26 = vpop.f32.mrf.mxu0  ;;  %2959 = vmatprep.subr.mxu1 %v3359_v17  ;;  %2876 = vmatpush3.msra.mxu0 %v3607_v13 }
 0x101   : > { %v562_v31 = vadd.f32 %v3522_v62, %v561_v26  ;;  %2828 = vmatprep.mubr.f32.mxu1 %v670_v0  ;;  %2960 = vmatpush3.msra.mxu1 %v3359_v17  ;;  %v673_v33 = vmax.f32 %v567_v25, 0.0  ;;  %v3620_v17 = vld [vmem:[%s4069_s5 + $0x38] sm:$0xff] }
 0x102   : > { %v2756_v15 = vpop.f32.mrf.mxu0  ;;  %2829 = vmatmul.mubr.f32.gmra.mxu1 %v671_v7  ;;  %2961 = vmatprep.subr.mxu1 %v3373_v19 }
 0x103   : > { %v672_v32 = vmax.f32 %v562_v31, 0.0  ;;  %2962 = vmatpush3.msra.mxu1 %v3373_v19  ;;  %v577_v34 = vadd.f32 %v2756_v15, %v3522_v62  ;;  %2877 = vmatprep.subr.mxu0 %v3620_v17 }
 0x104   : > { %v571_v36 = vpop.f32.mrf.mxu0  ;;  %2963 = vmatprep.subr.mxu1 %v3387_v21  ;;  %2878 = vmatpush3.msra.mxu0 %v3620_v17 }
 0x105   : > { %v572_v37 = vadd.f32 %v3522_v62, %v571_v36  ;;  %2831 = vmatprep.mubr.f32.mxu1 %v672_v32  ;;  %2964 = vmatpush3.msra.mxu1 %v3387_v21  ;;  %v675_v40 = vmax.f32 %v577_v34, 0.0  ;;  %v3637_v21 = vld [vmem:[%s4069_s5 + $0x28] sm:$0xff] }
 0x106   : > { %v2759_v19 = vpop.f32.mrf.mxu0  ;;  %2832 = vmatmul.mubr.f32.gmra.mxu1 %v673_v33  ;;  %2965 = vmatprep.subr.mxu1 %v3401_v23 }
 0x107   : > { %v674_v39 = vmax.f32 %v572_v37, 0.0  ;;  %2966 = vmatpush3.msra.mxu1 %v3401_v23  ;;  %v587_v41 = vadd.f32 %v2759_v19, %v3522_v62  ;;  %2879 = vmatprep.subr.mxu0 %v3628_v38 }
 0x108   : > { %v581_v43 = vpop.f32.mrf.mxu0  ;;  %3095 = vmatprep.subr.mxu1 %v3529_v29  ;;  %2880 = vmatpush3.msra.mxu0 %v3628_v38 }
 0x109   : > { %v582_v44 = vadd.f32 %v3522_v62, %v581_v43  ;;  %2834 = vmatprep.mubr.f32.mxu1 %v674_v39  ;;  %2881 = vmatprep.subr.mxu0 %v3637_v21  ;;  %v677_v47 = vmax.f32 %v587_v41, 0.0 }
 0x10a   : > { %v2762_v23 = vpop.f32.mrf.mxu0  ;;  %2835 = vmatmul.mubr.f32.gmra.mxu1 %v675_v40  ;;  %2882 = vmatpush3.msra.mxu0 %v3637_v21 }
 0x10b   : > { %v676_v46 = vmax.f32 %v582_v44, 0.0  ;;  %v597_v48 = vadd.f32 %v2762_v23, %v3522_v62  ;;  %2883 = vmatprep.subr.mxu0 %v3646_v45 }
 0x10c   : > { %v591_v49 = vpop.f32.mrf.mxu0  ;;  %2884 = vmatpush3.msra.mxu0 %v3646_v45 }
 0x10d   : > { %v592_v50 = vadd.f32 %v3522_v62, %v591_v49  ;;  %2837 = vmatprep.mubr.f32.mxu1 %v676_v46  ;;  %2885 = vmatprep.subr.mxu0 %v3654_v2  ;;  %v679_v54 = vmax.f32 %v597_v48, 0.0 }
 0x10e   : > { %v2765_v51 = vpop.f32.mrf.mxu0  ;;  %2838 = vmatmul.mubr.f32.gmra.mxu1 %v677_v47  ;;  %2886 = vmatpush3.msra.mxu0 %v3654_v2 }
 0x10f   : > { %v678_v53 = vmax.f32 %v592_v50, 0.0  ;;  %v607_v6 = vadd.f32 %v2765_v51, %v3522_v62  ;;  %2887 = vmatprep.subr.mxu0 %v3662_v52 }
 0x110   : > { %v601_v55 = vpop.f32.mrf.mxu0  ;;  %2888 = vmatpush3.msra.mxu0 %v3662_v52 }
 0x111   : > { %v602_v57 = vadd.f32 %v3522_v62, %v601_v55  ;;  %2840 = vmatprep.mubr.f32.mxu1 %v678_v53  ;;  %2889 = vmatprep.subr.mxu0 %v3670_v56  ;;  %v681_v11 = vmax.f32 %v607_v6, 0.0 }
 0x112   : > { %v2768_v61 = vpop.f32.mrf.mxu0  ;;  %2841 = vmatmul.mubr.f32.gmra.mxu1 %v679_v54  ;;  %2890 = vmatpush3.msra.mxu0 %v3670_v56 }
 0x113   : > { %v680_v63 = vmax.f32 %v602_v57, 0.0  ;;  %v617_v0 = vadd.f32 %v2768_v61, %v3522_v62  ;;  %v2323_v61 = vld [vmem:[%s3288_s21 + $0x100] sm:$0xff] }
 0x114   : > { %v611_v7 = vpop.f32.mrf.mxu0 }
 0x115   : > { %v612_v25 = vadd.f32 %v3522_v62, %v611_v7  ;;  %2843 = vmatprep.mubr.f32.mxu1 %v680_v63  ;;  %v683_v15 = vmax.f32 %v617_v0, 0.0  ;;  %v2324_v63 = vld [vmem:[%s3288_s21 + $0x108] sm:$0xff]  ;;  %v2326_v0 = vld [vmem:[%s3288_s21 + $0x118] sm:$0xff]  ;;  %v2327_v7 = vld [vmem:[%s3288_s21 + $0x120] sm:$0xff] }
 0x116   : > { %v2771_v26 = vpop.f32.mrf.mxu0  ;;  %2844 = vmatmul.mubr.f32.gmra.mxu1 %v681_v11  ;;  %v2325_v11 = vld [vmem:[%s3288_s21 + $0x110] sm:$0xff] }
 0x117   : > { %v682_v31 = vmax.f32 %v612_v25, 0.0  ;;  %v627_v32 = vadd.f32 %v2771_v26, %v3522_v62  ;;  %v2328_v25 = vld [vmem:[%s3288_s21 + $0x128] sm:$0xff]  ;;  %v972_v26 = vld [vmem:[%s4069_s5] sm:$0xff] }
 0x118   : > { %v621_v33 = vpop.f32.mrf.mxu0  ;;  %2891 = vmatprep.subr.mxu0 %v972_v26 }
 0x119   : > { %v622_v34 = vadd.f32 %v3522_v62, %v621_v33  ;;  %2846 = vmatprep.mubr.f32.mxu1 %v682_v31  ;;  %v685_v19 = vmax.f32 %v627_v32, 0.0  ;;  %2892 = vmatpush3.msra.mxu0 %v972_v26  ;;  %v2333_v31 = vld [vmem:[%s3288_s21 + $0x150] sm:$0xff]  ;;  %v2347_v33 = vld [vmem:[%s3288_s21 + $0x1c0] sm:$0xff] }
 0x11a   : > { %v2774_v36 = vpop.f32.mrf.mxu0  ;;  %2847 = vmatmul.mubr.f32.gmra.mxu1 %v683_v15  ;;  %3015 = vmatprep.subr.mxu0 %v3267_v4  ;;  %v2335_v15 = vld [vmem:[%s3288_s21 + $0x160] sm:$0xff]  ;;  %v2345_v32 = vld [vmem:[%s3288_s21 + $0x1b0] sm:$0xff] }
 0x11b   : > { %v684_v37 = vmax.f32 %v622_v34, 0.0  ;;  %v637_v39 = vadd.f32 %v2774_v36, %v3522_v62  ;;  %v2348_v34 = vld [vmem:[%s3288_s21 + $0x1c8] sm:$0xff]  ;;  %v2349_v36 = vld [vmem:[%s3288_s21 + $0x1d0] sm:$0xff] }
 0x11c   : > { %v631_v40 = vpop.f32.mrf.mxu0 }
 0x11d   : > { %v632_v41 = vadd.f32 %v3522_v62, %v631_v40  ;;  %2849 = vmatprep.mubr.f32.mxu1 %v684_v37  ;;  %v687_v23 = vmax.f32 %v637_v39, 0.0  ;;  %v2350_v37 = vld [vmem:[%s3288_s21 + $0x1d8] sm:$0xff]  ;;  %v2352_v39 = vld [vmem:[%s3288_s21 + $0x1e8] sm:$0xff]  ;;  %v2353_v40 = vld [vmem:[%s3288_s21 + $0x1f0] sm:$0xff] }
 0x11e   : > { %v2777_v43 = vpop.f32.mrf.mxu0  ;;  %2850 = vmatmul.mubr.f32.gmra.mxu1 %v685_v19  ;;  %v2351_v19 = vld [vmem:[%s3288_s21 + $0x1e0] sm:$0xff] }
 0x11f   : > { %v686_v44 = vmax.f32 %v632_v41, 0.0  ;;  %v647_v46 = vadd.f32 %v2777_v43, %v3522_v62  ;;  %v2354_v41 = vld [vmem:[%s3288_s21 + $0x1f8] sm:$0xff]  ;;  %v3787_v43 = vld [vmem:[%s4068_s4] ss:$0 sm:$0xff] }
 0x120   : > { %v641_v47 = vpop.f32.mrf.mxu0 }
 0x121   : > { %v642_v48 = vadd.f32 %v3522_v62, %v641_v47  ;;  %2852 = vmatprep.mubr.f32.mxu1 %v686_v44  ;;  %v689_v51 = vmax.f32 %v647_v46, 0.0 }
 0x122   : > { %v2780_v49 = vpop.f32.mrf.mxu0  ;;  %2853 = vmatmul.mubr.f32.gmra.mxu1 %v687_v23 }
 0x123   : > { %v688_v50 = vmax.f32 %v642_v48, 0.0  ;;  %v657_v53 = vadd.f32 %v2780_v49, %v3522_v62 }
 0x124   : > { %v651_v54 = vpop.f32.mrf.mxu0 }
 0x125   : > { %v652_v6 = vadd.f32 %v3522_v62, %v651_v54  ;;  %2855 = vmatprep.mubr.f32.mxu1 %v688_v50  ;;  %v691_v57 = vmax.f32 %v657_v53, 0.0 }
 0x126   : > { %2856 = vmatmul.mubr.f32.gmra.mxu1 %v689_v51 }
 0x127   : > { %v690_v55 = vmax.f32 %v652_v6, 0.0 }
 0x129   : > { %2858 = vmatprep.mubr.f32.mxu1 %v690_v55 }
 0x12a   : > { %2859 = vmatmul.mubr.f32.gmra.mxu1 %v691_v57 }
 0x12b   : > { %2967 = vmatprep.mubr.msk.f32.mxu1 %vm334_vm1, %v2323_v61 }
 0x12e   : > { %2968 = vmatmul.mubr.msk.f32.vlgmr.msra.gmra.mxu1 %vm334_vm1, %v2324_v63 }
 0x12f   : > { %2970 = vmatprep.mubr.msk.f32.mxu1 %vm334_vm1, %v2325_v11  ;;  %3096 = vmatpush3.msra.mxu1 %v3529_v29  ;;  %v2329_v29 = vld [vmem:[%s3288_s21 + $0x130] sm:$0xff] }
 0x130   : > { %3097 = vmatprep.subr.mxu1 %v3534_v30 }
 0x131   : > { %3098 = vmatpush3.msra.mxu1 %v3534_v30  ;;  %v2330_v30 = vld [vmem:[%s3288_s21 + $0x138] sm:$0xff] }
 0x132   : > { %2971 = vmatmul.mubr.msk.f32.gmra.mxu1 %vm334_vm1, %v2326_v0  ;;  %3099 = vmatprep.subr.mxu1 %v3542_v35 }
 0x133   : > { %2973 = vmatprep.mubr.msk.f32.mxu1 %vm334_vm1, %v2327_v7  ;;  %3100 = vmatpush3.msra.mxu1 %v3542_v35  ;;  %v2331_v35 = vld [vmem:[%s3288_s21 + $0x140] sm:$0xff] }
 0x134   : > { %3101 = vmatprep.subr.mxu1 %v3555_v42 }
 0x135   : > { %3102 = vmatpush3.msra.mxu1 %v3555_v42  ;;  %v2332_v42 = vld [vmem:[%s3288_s21 + $0x148] sm:$0xff] }
 0x136   : > { %2974 = vmatmul.mubr.msk.f32.gmra.mxu1 %vm334_vm1, %v2328_v25  ;;  %3103 = vmatprep.subr.mxu1 %v3568_v1 }
 0x137   : > { %2976 = vmatprep.mubr.msk.f32.mxu1 %vm334_vm1, %v2329_v29  ;;  %3104 = vmatpush3.msra.mxu1 %v3568_v1  ;;  %v2334_v1 = vld [vmem:[%s3288_s21 + $0x158] sm:$0xff] }
 0x138   : > { %3105 = vmatprep.subr.mxu1 %v3581_v3 }
 0x139   : > { %3106 = vmatpush3.msra.mxu1 %v3581_v3  ;;  %v2336_v3 = vld [vmem:[%s3288_s21 + $0x168] sm:$0xff] }
 0x13a   : > { %2977 = vmatmul.mubr.msk.f32.gmra.mxu1 %vm334_vm1, %v2330_v30  ;;  %3107 = vmatprep.subr.mxu1 %v3594_v9 }
 0x13b   : > { %2979 = vmatprep.mubr.msk.f32.mxu1 %vm334_vm1, %v2331_v35  ;;  %3108 = vmatpush3.msra.mxu1 %v3594_v9  ;;  %v2337_v9 = vld [vmem:[%s3288_s21 + $0x170] sm:$0xff] }
 0x13c   : > { %3109 = vmatprep.subr.mxu1 %v3607_v13 }
 0x13d   : > { %3110 = vmatpush3.msra.mxu1 %v3607_v13  ;;  %v2338_v13 = vld [vmem:[%s3288_s21 + $0x178] sm:$0xff] }
 0x13e   : > { %2980 = vmatmul.mubr.msk.f32.gmra.mxu1 %vm334_vm1, %v2332_v42  ;;  %3111 = vmatprep.subr.mxu1 %v3620_v17 }
 0x13f   : > { %2982 = vmatprep.mubr.msk.f32.mxu1 %vm334_vm1, %v2333_v31  ;;  %3112 = vmatpush3.msra.mxu1 %v3620_v17  ;;  %v2339_v17 = vld [vmem:[%s3288_s21 + $0x180] sm:$0xff] }
 0x140   : > { %3113 = vmatprep.subr.mxu1 %v3628_v38 }
 0x141   : > { %3114 = vmatpush3.msra.mxu1 %v3628_v38  ;;  %v2340_v38 = vld [vmem:[%s3288_s21 + $0x188] sm:$0xff] }
 0x142   : > { %2983 = vmatmul.mubr.msk.f32.gmra.mxu1 %vm334_vm1, %v2334_v1  ;;  %3115 = vmatprep.subr.mxu1 %v3637_v21 }
 0x143   : > { %2985 = vmatprep.mubr.msk.f32.mxu1 %vm334_vm1, %v2335_v15  ;;  %3116 = vmatpush3.msra.mxu1 %v3637_v21  ;;  %v2341_v21 = vld [vmem:[%s3288_s21 + $0x190] sm:$0xff] }
 0x144   : > { %3117 = vmatprep.subr.mxu1 %v3646_v45 }
 0x145   : > { %3118 = vmatpush3.msra.mxu1 %v3646_v45  ;;  %v2342_v45 = vld [vmem:[%s3288_s21 + $0x198] sm:$0xff] }
 0x146   : > { %2986 = vmatmul.mubr.msk.f32.gmra.mxu1 %vm334_vm1, %v2336_v3  ;;  %3119 = vmatprep.subr.mxu1 %v3654_v2 }
 0x147   : > { %2988 = vmatprep.mubr.msk.f32.mxu1 %vm334_vm1, %v2337_v9  ;;  %3120 = vmatpush3.msra.mxu1 %v3654_v2  ;;  %v2343_v2 = vld [vmem:[%s3288_s21 + $0x1a0] sm:$0xff] }
 0x148   : > { %3121 = vmatprep.subr.mxu1 %v3662_v52 }
 0x149   : > { %3122 = vmatpush3.msra.mxu1 %v3662_v52  ;;  %v2344_v52 = vld [vmem:[%s3288_s21 + $0x1a8] sm:$0xff] }
 0x14a   : > { %2989 = vmatmul.mubr.msk.f32.gmra.mxu1 %vm334_vm1, %v2338_v13  ;;  %3123 = vmatprep.subr.mxu1 %v3670_v56 }
 0x14b   : > { %2991 = vmatprep.mubr.msk.f32.mxu1 %vm334_vm1, %v2339_v17  ;;  %3124 = vmatpush3.msra.mxu1 %v3670_v56  ;;  %v2346_v56 = vld [vmem:[%s3288_s21 + $0x1b8] sm:$0xff] }
 0x14c   : > { %3125 = vmatprep.subr.mxu1 %v972_v26 }
 0x14d   : > { %3126 = vmatpush3.msra.mxu1 %v972_v26 }
 0x14e   : > { %2992 = vmatmul.mubr.msk.f32.gmra.mxu1 %vm334_vm1, %v2340_v38 }
 0x14f   : > { %2994 = vmatprep.mubr.msk.f32.mxu1 %vm334_vm1, %v2341_v21 }
 0x152   : > { %2995 = vmatmul.mubr.msk.f32.gmra.mxu1 %vm334_vm1, %v2342_v45 }
 0x153   : > { %2997 = vmatprep.mubr.msk.f32.mxu1 %vm334_vm1, %v2343_v2 }
 0x156   : > { %2998 = vmatmul.mubr.msk.f32.gmra.mxu1 %vm334_vm1, %v2344_v52 }
 0x157   : > { %3000 = vmatprep.mubr.msk.f32.mxu1 %vm334_vm1, %v2345_v32 }
 0x15a   : > { %3001 = vmatmul.mubr.msk.f32.gmra.mxu1 %vm334_vm1, %v2346_v56 }
 0x15b   : > { %3003 = vmatprep.mubr.msk.f32.mxu1 %vm334_vm1, %v2347_v33 }
 0x15e   : > { %3004 = vmatmul.mubr.msk.f32.gmra.mxu1 %vm334_vm1, %v2348_v34 }
 0x15f   : > { %3006 = vmatprep.mubr.msk.f32.mxu1 %vm334_vm1, %v2349_v36 }
 0x162   : > { %3007 = vmatmul.mubr.msk.f32.gmra.mxu1 %vm334_vm1, %v2350_v37 }
 0x163   : > { %3009 = vmatprep.mubr.msk.f32.mxu1 %vm334_vm1, %v2351_v19 }
 0x166   : > { %3010 = vmatmul.mubr.msk.f32.gmra.mxu1 %vm334_vm1, %v2352_v39 }
 0x167   : > { %3012 = vmatprep.mubr.msk.f32.mxu1 %vm334_vm1, %v2353_v40 }
 0x16a   : > { %3013 = vmatmul.mubr.msk.f32.gmra.mxu1 %vm334_vm1, %v2354_v41 }
 0x1ae   : > { %v2815_v44 = vpop.f32.mrf.mxu1 }
 0x1af   : > { %v787_v23 = vadd.f32 %v2815_v44, %v3787_v43 }
 0x1b0   : > { %v781_v46 = vpop.f32.mrf.mxu1 }
 0x1b1   : > { %v782_v47 = vadd.f32 %v3787_v43, %v781_v46  ;;  %v941_v50 = vmax.f32 %v787_v23, 0.0 }
 0x1b2   : > { %v2818_v48 = vpop.f32.mrf.mxu1 }
 0x1b3   : > { %v940_v49 = vmax.f32 %v782_v47, 0.0  ;;  %v797_v51 = vadd.f32 %v2818_v48, %v3787_v43 }
 0x1b4   : > { %v791_v53 = vpop.f32.mrf.mxu1 }
 0x1b5   : > { %v792_v54 = vadd.f32 %v3787_v43, %v791_v53  ;;  %2893 = vmatprep.mubr.f32.mxu0 %v940_v49  ;;  %v943_v57 = vmax.f32 %v797_v51, 0.0 }
 0x1b6   : > { %v2821_v6 = vpop.f32.mrf.mxu1  ;;  %2894 = vmatmul.mubr.f32.vlgmr.msra.gmra.mxu0 %v941_v50 }
 0x1b7   : > { %v942_v55 = vmax.f32 %v792_v54, 0.0  ;;  %3016 = vmatpush3.msra.mxu0 %v3267_v4  ;;  %v807_v61 = vadd.f32 %v2821_v6, %v3787_v43 }
 0x1b8   : > { %v801_v63 = vpop.f32.mrf.mxu1  ;;  %3017 = vmatprep.subr.mxu0 %v3272_v5 }
 0x1b9   : > { %v802_v11 = vadd.f32 %v3787_v43, %v801_v63  ;;  %2896 = vmatprep.mubr.f32.mxu0 %v942_v55  ;;  %3018 = vmatpush3.msra.mxu0 %v3272_v5  ;;  %v945_v25 = vmax.f32 %v807_v61, 0.0 }
 0x1ba   : > { %v2824_v0 = vpop.f32.mrf.mxu1  ;;  %2897 = vmatmul.mubr.f32.gmra.mxu0 %v943_v57  ;;  %3019 = vmatprep.subr.mxu0 %v3297_v8 }
 0x1bb   : > { %v944_v7 = vmax.f32 %v802_v11, 0.0  ;;  %3020 = vmatpush3.msra.mxu0 %v3297_v8  ;;  %v817_v4 = vadd.f32 %v2824_v0, %v3787_v43 }
 0x1bc   : > { %v811_v26 = vpop.f32.mrf.mxu1  ;;  %3021 = vmatprep.subr.mxu0 %v3311_v10 }
 0x1bd   : > { %v812_v29 = vadd.f32 %v3787_v43, %v811_v26  ;;  %2899 = vmatprep.mubr.f32.mxu0 %v944_v7  ;;  %3022 = vmatpush3.msra.mxu0 %v3311_v10  ;;  %v947_v35 = vmax.f32 %v817_v4, 0.0 }
 0x1be   : > { %v2827_v30 = vpop.f32.mrf.mxu1  ;;  %2900 = vmatmul.mubr.f32.gmra.mxu0 %v945_v25  ;;  %3023 = vmatprep.subr.mxu0 %v3325_v12 }
 0x1bf   : > { %v946_v5 = vmax.f32 %v812_v29, 0.0  ;;  %3024 = vmatpush3.msra.mxu0 %v3325_v12  ;;  %v827_v8 = vadd.f32 %v2827_v30, %v3787_v43 }
 0x1c0   : > { %v821_v42 = vpop.f32.mrf.mxu1  ;;  %3025 = vmatprep.subr.mxu0 %v3339_v14 }
 0x1c1   : > { %v822_v31 = vadd.f32 %v3787_v43, %v821_v42  ;;  %2902 = vmatprep.mubr.f32.mxu0 %v946_v5  ;;  %3026 = vmatpush3.msra.mxu0 %v3339_v14  ;;  %v949_v15 = vmax.f32 %v827_v8, 0.0 }
 0x1c2   : > { %v2830_v1 = vpop.f32.mrf.mxu1  ;;  %2903 = vmatmul.mubr.f32.gmra.mxu0 %v947_v35  ;;  %3027 = vmatprep.subr.mxu0 %v3353_v16 }
 0x1c3   : > { %v948_v10 = vmax.f32 %v822_v31, 0.0  ;;  %3028 = vmatpush3.msra.mxu0 %v3353_v16  ;;  %v837_v12 = vadd.f32 %v2830_v1, %v3787_v43 }
 0x1c4   : > { %v831_v3 = vpop.f32.mrf.mxu1  ;;  %3029 = vmatprep.subr.mxu0 %v3367_v18 }
 0x1c5   : > { %v832_v9 = vadd.f32 %v3787_v43, %v831_v3  ;;  %2905 = vmatprep.mubr.f32.mxu0 %v948_v10  ;;  %3030 = vmatpush3.msra.mxu0 %v3367_v18  ;;  %v951_v17 = vmax.f32 %v837_v12, 0.0 }
 0x1c6   : > { %v2833_v13 = vpop.f32.mrf.mxu1  ;;  %2906 = vmatmul.mubr.f32.gmra.mxu0 %v949_v15  ;;  %3031 = vmatprep.subr.mxu0 %v3381_v20 }
 0x1c7   : > { %v950_v14 = vmax.f32 %v832_v9, 0.0  ;;  %3032 = vmatpush3.msra.mxu0 %v3381_v20  ;;  %v847_v16 = vadd.f32 %v2833_v13, %v3787_v43 }
 0x1c8   : > { %v841_v38 = vpop.f32.mrf.mxu1  ;;  %3033 = vmatprep.subr.mxu0 %v3395_v22 }
 0x1c9   : > { %v842_v21 = vadd.f32 %v3787_v43, %v841_v38  ;;  %2908 = vmatprep.mubr.f32.mxu0 %v950_v14  ;;  %3034 = vmatpush3.msra.mxu0 %v3395_v22  ;;  %v953_v2 = vmax.f32 %v847_v16, 0.0 }
 0x1ca   : > { %v2836_v45 = vpop.f32.mrf.mxu1  ;;  %2909 = vmatmul.mubr.f32.gmra.mxu0 %v951_v17  ;;  %3035 = vmatprep.subr.mxu0 %v3409_v24 }
 0x1cb   : > { %v952_v18 = vmax.f32 %v842_v21, 0.0  ;;  %3036 = vmatpush3.msra.mxu0 %v3409_v24  ;;  %v857_v20 = vadd.f32 %v2836_v45, %v3787_v43 }
 0x1cc   : > { %v851_v52 = vpop.f32.mrf.mxu1  ;;  %3037 = vmatprep.subr.mxu0 %v3420_v27 }
 0x1cd   : > { %v852_v32 = vadd.f32 %v3787_v43, %v851_v52  ;;  %2911 = vmatprep.mubr.f32.mxu0 %v952_v18  ;;  %3038 = vmatpush3.msra.mxu0 %v3420_v27  ;;  %v955_v33 = vmax.f32 %v857_v20, 0.0 }
 0x1ce   : > { %v2839_v56 = vpop.f32.mrf.mxu1  ;;  %2912 = vmatmul.mubr.f32.gmra.mxu0 %v953_v2  ;;  %3039 = vmatprep.subr.mxu0 %v3429_v28 }
 0x1cf   : > { %v954_v22 = vmax.f32 %v852_v32, 0.0  ;;  %3040 = vmatpush3.msra.mxu0 %v3429_v28  ;;  %v867_v24 = vadd.f32 %v2839_v56, %v3787_v43 }
 0x1d0   : > { %v861_v34 = vpop.f32.mrf.mxu1  ;;  %3041 = vmatprep.subr.mxu0 %v3497_v58 }
 0x1d1   : > { %v862_v36 = vadd.f32 %v3787_v43, %v861_v34  ;;  %2914 = vmatprep.mubr.f32.mxu0 %v954_v22  ;;  %3042 = vmatpush3.msra.mxu0 %v3497_v58  ;;  %v957_v19 = vmax.f32 %v867_v24, 0.0 }
 0x1d2   : > { %v2842_v37 = vpop.f32.mrf.mxu1  ;;  %2915 = vmatmul.mubr.f32.gmra.mxu0 %v955_v33  ;;  %3043 = vmatprep.subr.mxu0 %v3504_v59 }
 0x1d3   : > { %v956_v27 = vmax.f32 %v862_v36, 0.0  ;;  %3044 = vmatpush3.msra.mxu0 %v3504_v59  ;;  %v877_v28 = vadd.f32 %v2842_v37, %v3787_v43 }
 0x1d4   : > { %v871_v39 = vpop.f32.mrf.mxu1  ;;  %3045 = vmatprep.subr.mxu0 %v3511_v60 }
 0x1d5   : > { %v872_v40 = vadd.f32 %v3787_v43, %v871_v39  ;;  %2917 = vmatprep.mubr.f32.mxu0 %v956_v27  ;;  %3046 = vmatpush3.msra.mxu0 %v3511_v60  ;;  %v959_v44 = vmax.f32 %v877_v28, 0.0 }
 0x1d6   : > { %v2845_v41 = vpop.f32.mrf.mxu1  ;;  %2918 = vmatmul.mubr.f32.gmra.mxu0 %v957_v19 }
 0x1d7   : > { %v958_v58 = vmax.f32 %v872_v40, 0.0  ;;  %v887_v23 = vadd.f32 %v2845_v41, %v3787_v43 }
 0x1d8   : > { %v881_v46 = vpop.f32.mrf.mxu1 }
 0x1d9   : > { %v882_v59 = vadd.f32 %v3787_v43, %v881_v46  ;;  %2920 = vmatprep.mubr.f32.mxu0 %v958_v58  ;;  %v961_v49 = vmax.f32 %v887_v23, 0.0 }
 0x1da   : > { %v2848_v47 = vpop.f32.mrf.mxu1  ;;  %2921 = vmatmul.mubr.f32.gmra.mxu0 %v959_v44 }
 0x1db   : > { %v960_v48 = vmax.f32 %v882_v59, 0.0  ;;  %v897_v50 = vadd.f32 %v2848_v47, %v3787_v43 }
 0x1dc   : > { %v891_v51 = vpop.f32.mrf.mxu1 }
 0x1dd   : > { %v892_v53 = vadd.f32 %v3787_v43, %v891_v51  ;;  %2923 = vmatprep.mubr.f32.mxu0 %v960_v48  ;;  %v963_v6 = vmax.f32 %v897_v50, 0.0 }
 0x1de   : > { %v2851_v60 = vpop.f32.mrf.mxu1  ;;  %2924 = vmatmul.mubr.f32.gmra.mxu0 %v961_v49 }
 0x1df   : > { %v962_v54 = vmax.f32 %v892_v53, 0.0  ;;  %v907_v55 = vadd.f32 %v2851_v60, %v3787_v43 }
 0x1e0   : > { %v901_v57 = vpop.f32.mrf.mxu1 }
 0x1e1   : > { %v902_v61 = vadd.f32 %v3787_v43, %v901_v57  ;;  %2926 = vmatprep.mubr.f32.mxu0 %v962_v54  ;;  %v965_v0 = vmax.f32 %v907_v55, 0.0 }
 0x1e2   : > { %v2854_v63 = vpop.f32.mrf.mxu1  ;;  %2927 = vmatmul.mubr.f32.gmra.mxu0 %v963_v6 }
 0x1e3   : > { %v964_v11 = vmax.f32 %v902_v61, 0.0  ;;  %v917_v7 = vadd.f32 %v2854_v63, %v3787_v43 }
 0x1e4   : > { %v911_v25 = vpop.f32.mrf.mxu1 }
 0x1e5   : > { %v912_v4 = vadd.f32 %v3787_v43, %v911_v25  ;;  %2929 = vmatprep.mubr.f32.mxu0 %v964_v11  ;;  %v967_v30 = vmax.f32 %v917_v7, 0.0  ;;  %v3869_v11 = vld [vmem:[%s4066_s2] ss:$0 sm:$0xff] }
 0x1e6   : > { %v2857_v26 = vpop.f32.mrf.mxu1  ;;  %2930 = vmatmul.mubr.f32.gmra.mxu0 %v965_v0 }
 0x1e7   : > { %v966_v29 = vmax.f32 %v912_v4, 0.0  ;;  %v927_v5 = vadd.f32 %v2857_v26, %v3787_v43 }
 0x1e8   : > { %v921_v35 = vpop.f32.mrf.mxu1 }
 0x1e9   : > { %v922_v8 = vadd.f32 %v3787_v43, %v921_v35  ;;  %2932 = vmatprep.mubr.f32.mxu0 %v966_v29  ;;  %v969_v1 = vmax.f32 %v927_v5, 0.0 }
 0x1ea   : > { %v2860_v42 = vpop.f32.mrf.mxu1  ;;  %2933 = vmatmul.mubr.f32.gmra.mxu0 %v967_v30 }
 0x1eb   : > { %v968_v31 = vmax.f32 %v922_v8, 0.0  ;;  %v937_v10 = vadd.f32 %v2860_v42, %v3787_v43 }
 0x1ec   : > { %v931_v15 = vpop.f32.mrf.mxu1 }
 0x1ed   : > { %v932_v12 = vadd.f32 %v3787_v43, %v931_v15  ;;  %2935 = vmatprep.mubr.f32.mxu0 %v968_v31  ;;  %v971_v13 = vmax.f32 %v937_v10, 0.0 }
 0x1ee   : > { %2936 = vmatmul.mubr.f32.gmra.mxu0 %v969_v1  ;;  %v2969_v3 = vpop.f32.mrf.mxu1 }
 0x1ef   : > { %v970_v9 = vmax.f32 %v932_v12, 0.0  ;;  %v1476_v14 = vadd.f32 %v2969_v3, %v3522_v62 }
 0x1f0   : > { %v1470_v17 = vpop.f32.mrf.mxu1 }
 0x1f1   : > { %v1471_v16 = vadd.f32 %v3522_v62, %v1470_v17  ;;  %2938 = vmatprep.mubr.f32.mxu0 %v970_v9  ;;  %v1630_v45 = vmax.f32 %v1476_v14, 0.0 }
 0x1f2   : > { %2939 = vmatmul.mubr.f32.gmra.mxu0 %v971_v13  ;;  %v2972_v38 = vpop.f32.mrf.mxu1 }
 0x1f3   : > { %v1629_v21 = vmax.f32 %v1471_v16, 0.0  ;;  %v1486_v18 = vadd.f32 %v2972_v38, %v3522_v62 }
 0x1f4   : > { %v1480_v2 = vpop.f32.mrf.mxu1 }
 0x1f5   : > { %v1481_v20 = vadd.f32 %v3522_v62, %v1480_v2  ;;  %3047 = vmatprep.mubr.f32.mxu0 %v1629_v21  ;;  %v1632_v56 = vmax.f32 %v1486_v18, 0.0 }
 0x1f6   : > { %v2975_v52 = vpop.f32.mrf.mxu1  ;;  %3048 = vmatmul.mubr.f32.vlgmr.msra.gmra.mxu0 %v1630_v45 }
 0x1f7   : > { %v1631_v32 = vmax.f32 %v1481_v20, 0.0  ;;  %v1496_v22 = vadd.f32 %v2975_v52, %v3522_v62 }
 0x1f8   : > { %v1490_v33 = vpop.f32.mrf.mxu1 }
 0x1f9   : > { %v1491_v24 = vadd.f32 %v3522_v62, %v1490_v33  ;;  %3050 = vmatprep.mubr.f32.mxu0 %v1631_v32  ;;  %v1634_v37 = vmax.f32 %v1496_v22, 0.0 }
 0x1fa   : > { %v2978_v34 = vpop.f32.mrf.mxu1  ;;  %3051 = vmatmul.mubr.f32.gmra.mxu0 %v1632_v56 }
 0x1fb   : > { %v1633_v36 = vmax.f32 %v1491_v24, 0.0  ;;  %v1506_v27 = vadd.f32 %v2978_v34, %v3522_v62 }
 0x1fc   : > { %v1500_v19 = vpop.f32.mrf.mxu1 }
 0x1fd   : > { %v1501_v28 = vadd.f32 %v3522_v62, %v1500_v19  ;;  %3053 = vmatprep.mubr.f32.mxu0 %v1633_v36  ;;  %v1636_v41 = vmax.f32 %v1506_v27, 0.0 }
 0x1fe   : > { %v2981_v39 = vpop.f32.mrf.mxu1  ;;  %3054 = vmatmul.mubr.f32.gmra.mxu0 %v1634_v37 }
 0x1ff   : > { %v1635_v40 = vmax.f32 %v1501_v28, 0.0  ;;  %v1516_v58 = vadd.f32 %v2981_v39, %v3522_v62 }
 0x200   : > { %v1510_v44 = vpop.f32.mrf.mxu1 }
 0x201   : > { %v1511_v23 = vadd.f32 %v3522_v62, %v1510_v44  ;;  %3056 = vmatprep.mubr.f32.mxu0 %v1635_v40  ;;  %v1638_v47 = vmax.f32 %v1516_v58, 0.0 }
 0x202   : > { %v2984_v46 = vpop.f32.mrf.mxu1  ;;  %3057 = vmatmul.mubr.f32.gmra.mxu0 %v1636_v41 }
 0x203   : > { %v1637_v59 = vmax.f32 %v1511_v23, 0.0  ;;  %v1526_v48 = vadd.f32 %v2984_v46, %v3522_v62 }
 0x204   : > { %v1520_v49 = vpop.f32.mrf.mxu1 }
 0x205   : > { %v1521_v50 = vadd.f32 %v3522_v62, %v1520_v49  ;;  %3059 = vmatprep.mubr.f32.mxu0 %v1637_v59  ;;  %v1640_v60 = vmax.f32 %v1526_v48, 0.0 }
 0x206   : > { %v2987_v51 = vpop.f32.mrf.mxu1  ;;  %3060 = vmatmul.mubr.f32.gmra.mxu0 %v1638_v47 }
 0x207   : > { %v1639_v53 = vmax.f32 %v1521_v50, 0.0  ;;  %v1536_v54 = vadd.f32 %v2987_v51, %v3522_v62  ;;  %v3892_v51 = vld [vmem:[%s4070_s6] ss:$0 sm:$0xff] }
 0x208   : > { %v1530_v6 = vpop.f32.mrf.mxu1 }
 0x209   : > { %v1531_v55 = vadd.f32 %v3522_v62, %v1530_v6  ;;  %3062 = vmatprep.mubr.f32.mxu0 %v1639_v53  ;;  %v1642_v63 = vmax.f32 %v1536_v54, 0.0 }
 0x20a   : > { %v2990_v57 = vpop.f32.mrf.mxu1  ;;  %3063 = vmatmul.mubr.f32.gmra.mxu0 %v1640_v60 }
 0x20b   : > { %v1641_v61 = vmax.f32 %v1531_v55, 0.0  ;;  %v1546_v0 = vadd.f32 %v3869_v11, %v2990_v57 }
 0x20c   : > { %v1540_v7 = vpop.f32.mrf.mxu1 }
 0x20d   : > { %v1541_v25 = vadd.f32 %v3869_v11, %v1540_v7  ;;  %3065 = vmatprep.mubr.f32.mxu0 %v1641_v61  ;;  %v1644_v62 = vmax.f32 %v1546_v0, 0.0 }
 0x20e   : > { %v2993_v4 = vpop.f32.mrf.mxu1  ;;  %3066 = vmatmul.mubr.f32.gmra.mxu0 %v1642_v63 }
 0x20f   : > { %v1643_v26 = vmax.f32 %v1541_v25, 0.0  ;;  %v1556_v29 = vadd.f32 %v3869_v11, %v2993_v4 }
 0x210   : > { %v1550_v30 = vpop.f32.mrf.mxu1 }
 0x211   : > { %v1551_v5 = vadd.f32 %v3869_v11, %v1550_v30  ;;  %3068 = vmatprep.mubr.f32.mxu0 %v1643_v26  ;;  %v1646_v42 = vmax.f32 %v1556_v29, 0.0 }
 0x212   : > { %v2996_v35 = vpop.f32.mrf.mxu1  ;;  %3069 = vmatmul.mubr.f32.gmra.mxu0 %v1644_v62 }
 0x213   : > { %v1645_v8 = vmax.f32 %v1551_v5, 0.0  ;;  %v1566_v31 = vadd.f32 %v3869_v11, %v2996_v35 }
 0x214   : > { %v1560_v1 = vpop.f32.mrf.mxu1 }
 0x215   : > { %v1561_v10 = vadd.f32 %v3869_v11, %v1560_v1  ;;  %3071 = vmatprep.mubr.f32.mxu0 %v1645_v8  ;;  %v1648_v3 = vmax.f32 %v1566_v31, 0.0 }
 0x216   : > { %v2999_v15 = vpop.f32.mrf.mxu1  ;;  %3072 = vmatmul.mubr.f32.gmra.mxu0 %v1646_v42 }
 0x217   : > { %v1647_v12 = vmax.f32 %v1561_v10, 0.0  ;;  %v1576_v9 = vadd.f32 %v3869_v11, %v2999_v15 }
 0x218   : > { %v1570_v13 = vpop.f32.mrf.mxu1 }
 0x219   : > { %v1571_v14 = vadd.f32 %v3869_v11, %v1570_v13  ;;  %3074 = vmatprep.mubr.f32.mxu0 %v1647_v12  ;;  %v1650_v38 = vmax.f32 %v1576_v9, 0.0 }
 0x21a   : > { %v3002_v17 = vpop.f32.mrf.mxu1  ;;  %3075 = vmatmul.mubr.f32.gmra.mxu0 %v1648_v3 }
 0x21b   : > { %v1649_v16 = vmax.f32 %v1571_v14, 0.0  ;;  %v1586_v21 = vadd.f32 %v3869_v11, %v3002_v17 }
 0x21c   : > { %v1580_v45 = vpop.f32.mrf.mxu1 }
 0x21d   : > { %v1581_v18 = vadd.f32 %v3869_v11, %v1580_v45  ;;  %3077 = vmatprep.mubr.f32.mxu0 %v1649_v16  ;;  %v1652_v52 = vmax.f32 %v1586_v21, 0.0 }
 0x21e   : > { %v3005_v2 = vpop.f32.mrf.mxu1  ;;  %3078 = vmatmul.mubr.f32.gmra.mxu0 %v1650_v38 }
 0x21f   : > { %v1651_v20 = vmax.f32 %v1581_v18, 0.0  ;;  %v1596_v32 = vadd.f32 %v3869_v11, %v3005_v2 }
 0x220   : > { %v1590_v56 = vpop.f32.mrf.mxu1 }
 0x221   : > { %v1591_v22 = vadd.f32 %v3869_v11, %v1590_v56  ;;  %3080 = vmatprep.mubr.f32.mxu0 %v1651_v20  ;;  %v1654_v34 = vmax.f32 %v1596_v32, 0.0 }
 0x222   : > { %v3008_v33 = vpop.f32.mrf.mxu1  ;;  %3081 = vmatmul.mubr.f32.gmra.mxu0 %v1652_v52 }
 0x223   : > { %v1653_v24 = vmax.f32 %v1591_v22, 0.0  ;;  %v1606_v36 = vadd.f32 %v3869_v11, %v3008_v33 }
 0x224   : > { %v1600_v37 = vpop.f32.mrf.mxu1 }
 0x225   : > { %v1601_v27 = vadd.f32 %v3869_v11, %v1600_v37  ;;  %3083 = vmatprep.mubr.f32.mxu0 %v1653_v24  ;;  %v1656_v39 = vmax.f32 %v1606_v36, 0.0 }
 0x226   : > { %v3011_v19 = vpop.f32.mrf.mxu1  ;;  %3084 = vmatmul.mubr.f32.gmra.mxu0 %v1654_v34 }
 0x227   : > { %v1655_v28 = vmax.f32 %v1601_v27, 0.0  ;;  %v1616_v40 = vadd.f32 %v3869_v11, %v3011_v19 }
 0x228   : > { %v1610_v41 = vpop.f32.mrf.mxu1 }
 0x229   : > { %v1611_v58 = vadd.f32 %v3869_v11, %v1610_v41  ;;  %3086 = vmatprep.mubr.f32.mxu0 %v1655_v28  ;;  %v1658_v46 = vmax.f32 %v1616_v40, 0.0 }
 0x22a   : > { %v3014_v44 = vpop.f32.mrf.mxu1  ;;  %3087 = vmatmul.mubr.f32.gmra.mxu0 %v1656_v39 }
 0x22b   : > { %v1657_v23 = vmax.f32 %v1611_v58, 0.0  ;;  %v1626_v59 = vadd.f32 %v3869_v11, %v3014_v44 }
 0x22c   : > { %v1620_v47 = vpop.f32.mrf.mxu1 }
 0x22d   : > { %v1621_v48 = vadd.f32 %v3869_v11, %v1620_v47  ;;  %3089 = vmatprep.mubr.f32.mxu0 %v1657_v23  ;;  %v1660_v50 = vmax.f32 %v1626_v59, 0.0 }
 0x22e   : > { %3090 = vmatmul.mubr.f32.gmra.mxu0 %v1658_v46 }
 0x22f   : > { %v1659_v49 = vmax.f32 %v1621_v48, 0.0 }
 0x231   : > { %3092 = vmatprep.mubr.f32.mxu0 %v1659_v49 }
 0x232   : > { %3093 = vmatmul.mubr.f32.gmra.mxu0 %v1660_v50 }
 0x276   : > { %v2895_v53 = vpop.f32.mrf.mxu0 }
 0x277   : > { %v1067_v60 = vadd.f32 %v2895_v53, %v3892_v51 }
 0x278   : > { %v1061_v54 = vpop.f32.mrf.mxu0 }
 0x279   : > { %1221 = vst [vmem:[%s3899_s12 + $0x8] sm:$0xff] %v1067_v60  ;;  %v1062_v6 = vadd.f32 %v3892_v51, %v1061_v54 }
 0x27a   : > { %v2898_v55 = vpop.f32.mrf.mxu0 }
 0x27b   : > { %1220 = vst [vmem:[%s3899_s12] sm:$0xff] %v1062_v6  ;;  %v1077_v57 = vadd.f32 %v2898_v55, %v3892_v51 }
 0x27c   : > { %v1071_v61 = vpop.f32.mrf.mxu0 }
 0x27d   : > { %1223 = vst [vmem:[%s3899_s12 + $0x18] sm:$0xff] %v1077_v57  ;;  %v1072_v63 = vadd.f32 %v3892_v51, %v1071_v61 }
 0x27e   : > { %v2901_v11 = vpop.f32.mrf.mxu0 }
 0x27f   : > { %1222 = vst [vmem:[%s3899_s12 + $0x10] sm:$0xff] %v1072_v63  ;;  %v1087_v0 = vadd.f32 %v2901_v11, %v3892_v51 }
 0x280   : > { %v1081_v7 = vpop.f32.mrf.mxu0 }
 0x281   : > { %1225 = vst [vmem:[%s3899_s12 + $0x28] sm:$0xff] %v1087_v0  ;;  %v1082_v25 = vadd.f32 %v3892_v51, %v1081_v7 }
 0x282   : > { %v2904_v4 = vpop.f32.mrf.mxu0 }
 0x283   : > { %1224 = vst [vmem:[%s3899_s12 + $0x20] sm:$0xff] %v1082_v25  ;;  %v1097_v26 = vadd.f32 %v2904_v4, %v3892_v51 }
 0x284   : > { %v1091_v62 = vpop.f32.mrf.mxu0 }
 0x285   : > { %1227 = vst [vmem:[%s3899_s12 + $0x38] sm:$0xff] %v1097_v26  ;;  %v1092_v29 = vadd.f32 %v3892_v51, %v1091_v62 }
 0x286   : > { %v2907_v30 = vpop.f32.mrf.mxu0 }
 0x287   : > { %1226 = vst [vmem:[%s3899_s12 + $0x30] sm:$0xff] %v1092_v29  ;;  %v1107_v5 = vadd.f32 %v2907_v30, %v3892_v51 }
 0x288   : > { %v1101_v35 = vpop.f32.mrf.mxu0 }
 0x289   : > { %1229 = vst [vmem:[%s3899_s12 + $0x48] sm:$0xff] %v1107_v5  ;;  %v1102_v8 = vadd.f32 %v3892_v51, %v1101_v35 }
 0x28a   : > { %v2910_v42 = vpop.f32.mrf.mxu0 }
 0x28b   : > { %1228 = vst [vmem:[%s3899_s12 + $0x40] sm:$0xff] %v1102_v8  ;;  %v1117_v31 = vadd.f32 %v2910_v42, %v3892_v51 }
 0x28c   : > { %v1111_v1 = vpop.f32.mrf.mxu0 }
 0x28d   : > { %1231 = vst [vmem:[%s3899_s12 + $0x58] sm:$0xff] %v1117_v31  ;;  %v1112_v10 = vadd.f32 %v3892_v51, %v1111_v1 }
 0x28e   : > { %v2913_v15 = vpop.f32.mrf.mxu0 }
 0x28f   : > { %1230 = vst [vmem:[%s3899_s12 + $0x50] sm:$0xff] %v1112_v10  ;;  %v1127_v12 = vadd.f32 %v2913_v15, %v3892_v51 }
 0x290   : > { %v1121_v3 = vpop.f32.mrf.mxu0 }
 0x291   : > { %1233 = vst [vmem:[%s3899_s12 + $0x68] sm:$0xff] %v1127_v12  ;;  %v1122_v9 = vadd.f32 %v3892_v51, %v1121_v3 }
 0x292   : > { %v2916_v13 = vpop.f32.mrf.mxu0 }
 0x293   : > { %1232 = vst [vmem:[%s3899_s12 + $0x60] sm:$0xff] %v1122_v9  ;;  %v1137_v14 = vadd.f32 %v2916_v13, %v3892_v51 }
 0x294   : > { %v1131_v17 = vpop.f32.mrf.mxu0 }
 0x295   : > { %1235 = vst [vmem:[%s3899_s12 + $0x78] sm:$0xff] %v1137_v14  ;;  %v1132_v16 = vadd.f32 %v3892_v51, %v1131_v17 }
 0x296   : > { %v2919_v38 = vpop.f32.mrf.mxu0 }
 0x297   : > { %1234 = vst [vmem:[%s3899_s12 + $0x70] sm:$0xff] %v1132_v16  ;;  %v1147_v21 = vadd.f32 %v2919_v38, %v3892_v51 }
 0x298   : > { %v1141_v45 = vpop.f32.mrf.mxu0 }
 0x299   : > { %1237 = vst [vmem:[%s3899_s12 + $0x88] sm:$0xff] %v1147_v21  ;;  %v1142_v18 = vadd.f32 %v3892_v51, %v1141_v45 }
 0x29a   : > { %v2922_v2 = vpop.f32.mrf.mxu0 }
 0x29b   : > { %1236 = vst [vmem:[%s3899_s12 + $0x80] sm:$0xff] %v1142_v18  ;;  %v1157_v20 = vadd.f32 %v2922_v2, %v3892_v51 }
 0x29c   : > { %v1151_v52 = vpop.f32.mrf.mxu0 }
 0x29d   : > { %1239 = vst [vmem:[%s3899_s12 + $0x98] sm:$0xff] %v1157_v20  ;;  %v1152_v32 = vadd.f32 %v3892_v51, %v1151_v52 }
 0x29e   : > { %v2925_v56 = vpop.f32.mrf.mxu0 }
 0x29f   : > { %1238 = vst [vmem:[%s3899_s12 + $0x90] sm:$0xff] %v1152_v32  ;;  %v1167_v22 = vadd.f32 %v2925_v56, %v3892_v51 }
 0x2a0   : > { %v1161_v33 = vpop.f32.mrf.mxu0 }
 0x2a1   : > { %1241 = vst [vmem:[%s3899_s12 + $0xa8] sm:$0xff] %v1167_v22  ;;  %v1162_v24 = vadd.f32 %v3892_v51, %v1161_v33 }
 0x2a2   : > { %v2928_v34 = vpop.f32.mrf.mxu0 }
 0x2a3   : > { %1240 = vst [vmem:[%s3899_s12 + $0xa0] sm:$0xff] %v1162_v24  ;;  %v1177_v36 = vadd.f32 %v2928_v34, %v3892_v51 }
 0x2a4   : > { %v1171_v37 = vpop.f32.mrf.mxu0 }
 0x2a5   : > { %1243 = vst [vmem:[%s3899_s12 + $0xb8] sm:$0xff] %v1177_v36  ;;  %v1172_v27 = vadd.f32 %v3892_v51, %v1171_v37 }
 0x2a6   : > { %v2931_v19 = vpop.f32.mrf.mxu0 }
 0x2a7   : > { %1242 = vst [vmem:[%s3899_s12 + $0xb0] sm:$0xff] %v1172_v27  ;;  %v1187_v28 = vadd.f32 %v2931_v19, %v3892_v51 }
 0x2a8   : > { %v1181_v39 = vpop.f32.mrf.mxu0 }
 0x2a9   : > { %1245 = vst [vmem:[%s3899_s12 + $0xc8] sm:$0xff] %v1187_v28  ;;  %v1182_v40 = vadd.f32 %v3892_v51, %v1181_v39 }
 0x2aa   : > { %v2934_v41 = vpop.f32.mrf.mxu0 }
 0x2ab   : > { %1244 = vst [vmem:[%s3899_s12 + $0xc0] sm:$0xff] %v1182_v40  ;;  %v1197_v58 = vadd.f32 %v2934_v41, %v3892_v51 }
 0x2ac   : > { %v1191_v44 = vpop.f32.mrf.mxu0 }
 0x2ad   : > { %1247 = vst [vmem:[%s3899_s12 + $0xd8] sm:$0xff] %v1197_v58  ;;  %v1192_v23 = vadd.f32 %v3892_v51, %v1191_v44 }
 0x2ae   : > { %v2937_v46 = vpop.f32.mrf.mxu0 }
 0x2af   : > { %1246 = vst [vmem:[%s3899_s12 + $0xd0] sm:$0xff] %v1192_v23  ;;  %v1207_v59 = vadd.f32 %v2937_v46, %v3892_v51 }
 0x2b0   : > { %v1201_v47 = vpop.f32.mrf.mxu0 }
 0x2b1   : > { %1249 = vst [vmem:[%s3899_s12 + $0xe8] sm:$0xff] %v1207_v59  ;;  %v1202_v48 = vadd.f32 %v3892_v51, %v1201_v47 }
 0x2b2   : > { %v2940_v49 = vpop.f32.mrf.mxu0 }
 0x2b3   : > { %1248 = vst [vmem:[%s3899_s12 + $0xe0] sm:$0xff] %v1202_v48  ;;  %v1217_v50 = vadd.f32 %v2940_v49, %v3892_v51 }
 0x2b4   : > { %v1211_v53 = vpop.f32.mrf.mxu0 }
 0x2b5   : > { %1251 = vst [vmem:[%s3899_s12 + $0xf8] sm:$0xff] %v1217_v50  ;;  %v1212_v60 = vadd.f32 %v3892_v51, %v1211_v53 }
 0x2b6   : > { %v3049_v54 = vpop.f32.mrf.mxu0 }
 0x2b7   : > { %1250 = vst [vmem:[%s3899_s12 + $0xf0] sm:$0xff] %v1212_v60  ;;  %v1756_v6 = vadd.f32 %v3049_v54, %v3787_v43 }
 0x2b8   : > { %v1750_v55 = vpop.f32.mrf.mxu0 }
 0x2b9   : > { %v1751_v57 = vadd.f32 %v3787_v43, %v1750_v55  ;;  %v1910_v11 = vmax.f32 %v1756_v6, 0.0 }
 0x2ba   : > { %v3052_v61 = vpop.f32.mrf.mxu0 }
 0x2bb   : > { %v1909_v63 = vmax.f32 %v1751_v57, 0.0  ;;  %v1766_v0 = vadd.f32 %v3052_v61, %v3787_v43 }
 0x2bc   : > { %v1760_v7 = vpop.f32.mrf.mxu0 }
 0x2bd   : > { %v1761_v25 = vadd.f32 %v3787_v43, %v1760_v7  ;;  %3127 = vmatprep.mubr.f32.mxu1 %v1909_v63  ;;  %v1912_v62 = vmax.f32 %v1766_v0, 0.0 }
 0x2be   : > { %v3055_v4 = vpop.f32.mrf.mxu0  ;;  %3128 = vmatmul.mubr.f32.vlgmr.msra.gmra.mxu1 %v1910_v11 }
 0x2bf   : > { %v1911_v26 = vmax.f32 %v1761_v25, 0.0  ;;  %v1776_v29 = vadd.f32 %v3055_v4, %v3787_v43 }
 0x2c0   : > { %v1770_v30 = vpop.f32.mrf.mxu0 }
 0x2c1   : > { %v1771_v5 = vadd.f32 %v3787_v43, %v1770_v30  ;;  %3130 = vmatprep.mubr.f32.mxu1 %v1911_v26  ;;  %v1914_v42 = vmax.f32 %v1776_v29, 0.0 }
 0x2c2   : > { %v3058_v35 = vpop.f32.mrf.mxu0  ;;  %3131 = vmatmul.mubr.f32.gmra.mxu1 %v1912_v62 }
 0x2c3   : > { %v1913_v8 = vmax.f32 %v1771_v5, 0.0  ;;  %v1786_v31 = vadd.f32 %v3058_v35, %v3787_v43 }
 0x2c4   : > { %v1780_v1 = vpop.f32.mrf.mxu0 }
 0x2c5   : > { %v1781_v10 = vadd.f32 %v3787_v43, %v1780_v1  ;;  %3133 = vmatprep.mubr.f32.mxu1 %v1913_v8  ;;  %v1916_v3 = vmax.f32 %v1786_v31, 0.0 }
 0x2c6   : > { %v3061_v15 = vpop.f32.mrf.mxu0  ;;  %3134 = vmatmul.mubr.f32.gmra.mxu1 %v1914_v42 }
 0x2c7   : > { %v1915_v12 = vmax.f32 %v1781_v10, 0.0  ;;  %v1796_v9 = vadd.f32 %v3061_v15, %v3787_v43 }
 0x2c8   : > { %v1790_v13 = vpop.f32.mrf.mxu0 }
 0x2c9   : > { %v1791_v14 = vadd.f32 %v3787_v43, %v1790_v13  ;;  %3136 = vmatprep.mubr.f32.mxu1 %v1915_v12  ;;  %v1918_v38 = vmax.f32 %v1796_v9, 0.0 }
 0x2ca   : > { %v3064_v17 = vpop.f32.mrf.mxu0  ;;  %3137 = vmatmul.mubr.f32.gmra.mxu1 %v1916_v3 }
 0x2cb   : > { %v1917_v16 = vmax.f32 %v1791_v14, 0.0  ;;  %v1806_v21 = vadd.f32 %v3064_v17, %v3787_v43 }
 0x2cc   : > { %v1800_v45 = vpop.f32.mrf.mxu0 }
 0x2cd   : > { %v1801_v18 = vadd.f32 %v3787_v43, %v1800_v45  ;;  %3139 = vmatprep.mubr.f32.mxu1 %v1917_v16  ;;  %v1920_v52 = vmax.f32 %v1806_v21, 0.0 }
 0x2ce   : > { %v3067_v2 = vpop.f32.mrf.mxu0  ;;  %3140 = vmatmul.mubr.f32.gmra.mxu1 %v1918_v38 }
 0x2cf   : > { %v1919_v20 = vmax.f32 %v1801_v18, 0.0  ;;  %v1816_v32 = vadd.f32 %v3067_v2, %v3787_v43 }
 0x2d0   : > { %v1810_v56 = vpop.f32.mrf.mxu0 }
 0x2d1   : > { %v1811_v22 = vadd.f32 %v3787_v43, %v1810_v56  ;;  %3142 = vmatprep.mubr.f32.mxu1 %v1919_v20  ;;  %v1922_v34 = vmax.f32 %v1816_v32, 0.0 }
 0x2d2   : > { %v3070_v33 = vpop.f32.mrf.mxu0  ;;  %3143 = vmatmul.mubr.f32.gmra.mxu1 %v1920_v52 }
 0x2d3   : > { %v1921_v24 = vmax.f32 %v1811_v22, 0.0  ;;  %v1826_v36 = vadd.f32 %v3070_v33, %v3787_v43 }
 0x2d4   : > { %v1820_v37 = vpop.f32.mrf.mxu0 }
 0x2d5   : > { %v1821_v27 = vadd.f32 %v3787_v43, %v1820_v37  ;;  %3145 = vmatprep.mubr.f32.mxu1 %v1921_v24  ;;  %v1924_v39 = vmax.f32 %v1826_v36, 0.0 }
 0x2d6   : > { %v3073_v19 = vpop.f32.mrf.mxu0  ;;  %3146 = vmatmul.mubr.f32.gmra.mxu1 %v1922_v34 }
 0x2d7   : > { %v1923_v28 = vmax.f32 %v1821_v27, 0.0  ;;  %v1836_v40 = vadd.f32 %v3073_v19, %v3787_v43 }
 0x2d8   : > { %v1830_v41 = vpop.f32.mrf.mxu0 }
 0x2d9   : > { %v1831_v58 = vadd.f32 %v3787_v43, %v1830_v41  ;;  %3148 = vmatprep.mubr.f32.mxu1 %v1923_v28  ;;  %v1926_v46 = vmax.f32 %v1836_v40, 0.0 }
 0x2da   : > { %v3076_v44 = vpop.f32.mrf.mxu0  ;;  %3149 = vmatmul.mubr.f32.gmra.mxu1 %v1924_v39 }
 0x2db   : > { %v1925_v23 = vmax.f32 %v1831_v58, 0.0  ;;  %v1846_v59 = vadd.f32 %v3076_v44, %v3787_v43 }
 0x2dc   : > { %v1840_v47 = vpop.f32.mrf.mxu0 }
 0x2dd   : > { %v1841_v48 = vadd.f32 %v3787_v43, %v1840_v47  ;;  %3151 = vmatprep.mubr.f32.mxu1 %v1925_v23  ;;  %v1928_v53 = vmax.f32 %v1846_v59, 0.0 }
 0x2de   : > { %v3079_v49 = vpop.f32.mrf.mxu0  ;;  %3152 = vmatmul.mubr.f32.gmra.mxu1 %v1926_v46 }
 0x2df   : > { %v1927_v50 = vmax.f32 %v1841_v48, 0.0  ;;  %v1856_v60 = vadd.f32 %v3079_v49, %v3787_v43 }
 0x2e0   : > { %v1850_v54 = vpop.f32.mrf.mxu0 }
 0x2e1   : > { %v1851_v6 = vadd.f32 %v3787_v43, %v1850_v54  ;;  %3154 = vmatprep.mubr.f32.mxu1 %v1927_v50  ;;  %v1930_v61 = vmax.f32 %v1856_v60, 0.0 }
 0x2e2   : > { %v3082_v55 = vpop.f32.mrf.mxu0  ;;  %3155 = vmatmul.mubr.f32.gmra.mxu1 %v1928_v53 }
 0x2e3   : > { %v1929_v57 = vmax.f32 %v1851_v6, 0.0  ;;  %v1866_v63 = vadd.f32 %v3082_v55, %v3787_v43 }
 0x2e4   : > { %v1860_v11 = vpop.f32.mrf.mxu0 }
 0x2e5   : > { %v1861_v0 = vadd.f32 %v3787_v43, %v1860_v11  ;;  %3157 = vmatprep.mubr.f32.mxu1 %v1929_v57  ;;  %v1932_v4 = vmax.f32 %v1866_v63, 0.0 }
 0x2e6   : > { %v3085_v7 = vpop.f32.mrf.mxu0  ;;  %3158 = vmatmul.mubr.f32.gmra.mxu1 %v1930_v61 }
 0x2e7   : > { %v1931_v25 = vmax.f32 %v1861_v0, 0.0  ;;  %v1876_v26 = vadd.f32 %v3085_v7, %v3787_v43 }
 0x2e8   : > { %v1870_v62 = vpop.f32.mrf.mxu0 }
 0x2e9   : > { %v1871_v29 = vadd.f32 %v3787_v43, %v1870_v62  ;;  %3160 = vmatprep.mubr.f32.mxu1 %v1931_v25  ;;  %v1934_v35 = vmax.f32 %v1876_v26, 0.0 }
 0x2ea   : > { %v3088_v30 = vpop.f32.mrf.mxu0  ;;  %3161 = vmatmul.mubr.f32.gmra.mxu1 %v1932_v4 }
 0x2eb   : > { %v1933_v5 = vmax.f32 %v1871_v29, 0.0  ;;  %v1886_v8 = vadd.f32 %v3088_v30, %v3787_v43 }
 0x2ec   : > { %v1880_v42 = vpop.f32.mrf.mxu0 }
 0x2ed   : > { %v1881_v31 = vadd.f32 %v3787_v43, %v1880_v42  ;;  %3163 = vmatprep.mubr.f32.mxu1 %v1933_v5  ;;  %v1936_v15 = vmax.f32 %v1886_v8, 0.0 }
 0x2ee   : > { %v3091_v1 = vpop.f32.mrf.mxu0  ;;  %3164 = vmatmul.mubr.f32.gmra.mxu1 %v1934_v35 }
 0x2ef   : > { %v1935_v10 = vmax.f32 %v1881_v31, 0.0  ;;  %v1896_v12 = vadd.f32 %v3091_v1, %v3787_v43 }
 0x2f0   : > { %v1890_v3 = vpop.f32.mrf.mxu0 }
 0x2f1   : > { %v1891_v9 = vadd.f32 %v3787_v43, %v1890_v3  ;;  %3166 = vmatprep.mubr.f32.mxu1 %v1935_v10  ;;  %v1938_v17 = vmax.f32 %v1896_v12, 0.0 }
 0x2f2   : > { %v3094_v13 = vpop.f32.mrf.mxu0  ;;  %3167 = vmatmul.mubr.f32.gmra.mxu1 %v1936_v15 }
 0x2f3   : > { %v1937_v14 = vmax.f32 %v1891_v9, 0.0  ;;  %v1906_v16 = vadd.f32 %v3094_v13, %v3787_v43 }
 0x2f4   : > { %v1900_v38 = vpop.f32.mrf.mxu0 }
 0x2f5   : > { %v1901_v21 = vadd.f32 %v3787_v43, %v1900_v38  ;;  %3169 = vmatprep.mubr.f32.mxu1 %v1937_v14  ;;  %v1940_v18 = vmax.f32 %v1906_v16, 0.0 }
 0x2f6   : > { %3170 = vmatmul.mubr.f32.gmra.mxu1 %v1938_v17 }
 0x2f7   : > { %v1939_v45 = vmax.f32 %v1901_v21, 0.0 }
 0x2f9   : > { %3172 = vmatprep.mubr.f32.mxu1 %v1939_v45 }
 0x2fa   : > { %3173 = vmatmul.mubr.f32.gmra.mxu1 %v1940_v18 }
 0x37e   : > { %v3129_v2 = vpop.f32.mrf.mxu1 }
 0x37f   : > { %v2036_v20 = vadd.f32 %v3129_v2, %v3892_v51 }
 0x380   : > { %v2030_v52 = vpop.f32.mrf.mxu1 }
 0x381   : > { %2392 = vst [vmem:[%s3899_s12 + $0x108] sm:$0xff] %v2036_v20  ;;  %v2031_v32 = vadd.f32 %v3892_v51, %v2030_v52 }
 0x382   : > { %v3132_v56 = vpop.f32.mrf.mxu1 }
 0x383   : > { %2391 = vst [vmem:[%s3899_s12 + $0x100] sm:$0xff] %v2031_v32  ;;  %v2046_v43 = vadd.f32 %v3132_v56, %v3892_v51 }
 0x384   : > { %v2040_v22 = vpop.f32.mrf.mxu1 }
 0x385   : > { %2394 = vst [vmem:[%s3899_s12 + $0x118] sm:$0xff] %v2046_v43  ;;  %v2041_v33 = vadd.f32 %v3892_v51, %v2040_v22 }
 0x386   : > { %v3135_v24 = vpop.f32.mrf.mxu1 }
 0x387   : > { %2393 = vst [vmem:[%s3899_s12 + $0x110] sm:$0xff] %v2041_v33  ;;  %v2056_v34 = vadd.f32 %v3135_v24, %v3892_v51 }
 0x388   : > { %v2050_v36 = vpop.f32.mrf.mxu1 }
 0x389   : > { %2396 = vst [vmem:[%s3899_s12 + $0x128] sm:$0xff] %v2056_v34  ;;  %v2051_v37 = vadd.f32 %v3892_v51, %v2050_v36 }
 0x38a   : > { %v3138_v27 = vpop.f32.mrf.mxu1 }
 0x38b   : > { %2395 = vst [vmem:[%s3899_s12 + $0x120] sm:$0xff] %v2051_v37  ;;  %v2066_v19 = vadd.f32 %v3138_v27, %v3892_v51 }
 0x38c   : > { %v2060_v28 = vpop.f32.mrf.mxu1 }
 0x38d   : > { %2398 = vst [vmem:[%s3899_s12 + $0x138] sm:$0xff] %v2066_v19  ;;  %v2061_v39 = vadd.f32 %v3892_v51, %v2060_v28 }
 0x38e   : > { %v3141_v40 = vpop.f32.mrf.mxu1 }
 0x38f   : > { %2397 = vst [vmem:[%s3899_s12 + $0x130] sm:$0xff] %v2061_v39  ;;  %v2076_v41 = vadd.f32 %v3141_v40, %v3892_v51 }
 0x390   : > { %v2070_v58 = vpop.f32.mrf.mxu1 }
 0x391   : > { %2400 = vst [vmem:[%s3899_s12 + $0x148] sm:$0xff] %v2076_v41  ;;  %v2071_v44 = vadd.f32 %v3892_v51, %v2070_v58 }
 0x392   : > { %v3144_v23 = vpop.f32.mrf.mxu1 }
 0x393   : > { %2399 = vst [vmem:[%s3899_s12 + $0x140] sm:$0xff] %v2071_v44  ;;  %v2086_v46 = vadd.f32 %v3144_v23, %v3892_v51 }
 0x394   : > { %v2080_v59 = vpop.f32.mrf.mxu1 }
 0x395   : > { %2402 = vst [vmem:[%s3899_s12 + $0x158] sm:$0xff] %v2086_v46  ;;  %v2081_v47 = vadd.f32 %v3892_v51, %v2080_v59 }
 0x396   : > { %v3147_v48 = vpop.f32.mrf.mxu1 }
 0x397   : > { %2401 = vst [vmem:[%s3899_s12 + $0x150] sm:$0xff] %v2081_v47  ;;  %v2096_v49 = vadd.f32 %v3147_v48, %v3892_v51 }
 0x398   : > { %v2090_v50 = vpop.f32.mrf.mxu1 }
 0x399   : > { %2404 = vst [vmem:[%s3899_s12 + $0x168] sm:$0xff] %v2096_v49  ;;  %v2091_v53 = vadd.f32 %v3892_v51, %v2090_v50 }
 0x39a   : > { %v3150_v60 = vpop.f32.mrf.mxu1 }
 0x39b   : > { %2403 = vst [vmem:[%s3899_s12 + $0x160] sm:$0xff] %v2091_v53  ;;  %v2106_v54 = vadd.f32 %v3150_v60, %v3892_v51 }
 0x39c   : > { %v2100_v6 = vpop.f32.mrf.mxu1 }
 0x39d   : > { %2406 = vst [vmem:[%s3899_s12 + $0x178] sm:$0xff] %v2106_v54  ;;  %v2101_v55 = vadd.f32 %v3892_v51, %v2100_v6 }
 0x39e   : > { %v3153_v57 = vpop.f32.mrf.mxu1 }
 0x39f   : > { %2405 = vst [vmem:[%s3899_s12 + $0x170] sm:$0xff] %v2101_v55  ;;  %v2116_v61 = vadd.f32 %v3153_v57, %v3892_v51 }
 0x3a0   : > { %v2110_v63 = vpop.f32.mrf.mxu1 }
 0x3a1   : > { %2408 = vst [vmem:[%s3899_s12 + $0x188] sm:$0xff] %v2116_v61  ;;  %v2111_v11 = vadd.f32 %v3892_v51, %v2110_v63 }
 0x3a2   : > { %v3156_v0 = vpop.f32.mrf.mxu1 }
 0x3a3   : > { %2407 = vst [vmem:[%s3899_s12 + $0x180] sm:$0xff] %v2111_v11  ;;  %v2126_v7 = vadd.f32 %v3156_v0, %v3892_v51 }
 0x3a4   : > { %v2120_v25 = vpop.f32.mrf.mxu1 }
 0x3a5   : > { %2410 = vst [vmem:[%s3899_s12 + $0x198] sm:$0xff] %v2126_v7  ;;  %v2121_v4 = vadd.f32 %v3892_v51, %v2120_v25 }
 0x3a6   : > { %v3159_v26 = vpop.f32.mrf.mxu1 }
 0x3a7   : > { %2409 = vst [vmem:[%s3899_s12 + $0x190] sm:$0xff] %v2121_v4  ;;  %v2136_v62 = vadd.f32 %v3159_v26, %v3892_v51 }
 0x3a8   : > { %v2130_v29 = vpop.f32.mrf.mxu1 }
 0x3a9   : > { %2412 = vst [vmem:[%s3899_s12 + $0x1a8] sm:$0xff] %v2136_v62  ;;  %v2131_v30 = vadd.f32 %v3892_v51, %v2130_v29 }
 0x3aa   : > { %v3162_v5 = vpop.f32.mrf.mxu1 }
 0x3ab   : > { %2411 = vst [vmem:[%s3899_s12 + $0x1a0] sm:$0xff] %v2131_v30  ;;  %v2146_v35 = vadd.f32 %v3162_v5, %v3892_v51 }
 0x3ac   : > { %v2140_v8 = vpop.f32.mrf.mxu1 }
 0x3ad   : > { %2414 = vst [vmem:[%s3899_s12 + $0x1b8] sm:$0xff] %v2146_v35  ;;  %v2141_v42 = vadd.f32 %v3892_v51, %v2140_v8 }
 0x3ae   : > { %v3165_v31 = vpop.f32.mrf.mxu1 }
 0x3af   : > { %2413 = vst [vmem:[%s3899_s12 + $0x1b0] sm:$0xff] %v2141_v42  ;;  %v2156_v1 = vadd.f32 %v3165_v31, %v3892_v51 }
 0x3b0   : > { %v2150_v10 = vpop.f32.mrf.mxu1 }
 0x3b1   : > { %2416 = vst [vmem:[%s3899_s12 + $0x1c8] sm:$0xff] %v2156_v1  ;;  %v2151_v15 = vadd.f32 %v3892_v51, %v2150_v10 }
 0x3b2   : > { %v3168_v12 = vpop.f32.mrf.mxu1 }
 0x3b3   : > { %2415 = vst [vmem:[%s3899_s12 + $0x1c0] sm:$0xff] %v2151_v15  ;;  %v2166_v3 = vadd.f32 %v3168_v12, %v3892_v51 }
 0x3b4   : > { %v2160_v9 = vpop.f32.mrf.mxu1 }
 0x3b5   : > { %2418 = vst [vmem:[%s3899_s12 + $0x1d8] sm:$0xff] %v2166_v3  ;;  %v2161_v13 = vadd.f32 %v3892_v51, %v2160_v9 }
 0x3b6   : > { %v3171_v14 = vpop.f32.mrf.mxu1 }
 0x3b7   : > { %2417 = vst [vmem:[%s3899_s12 + $0x1d0] sm:$0xff] %v2161_v13  ;;  %v2176_v17 = vadd.f32 %v3171_v14, %v3892_v51 }
 0x3b8   : > { %v2170_v16 = vpop.f32.mrf.mxu1 }
 0x3b9   : > { %2420 = vst [vmem:[%s3899_s12 + $0x1e8] sm:$0xff] %v2176_v17  ;;  %v2171_v38 = vadd.f32 %v3892_v51, %v2170_v16 }
 0x3ba   : > { %v3174_v21 = vpop.f32.mrf.mxu1 }
 0x3bb   : > { %2419 = vst [vmem:[%s3899_s12 + $0x1e0] sm:$0xff] %v2171_v38  ;;  %v2186_v45 = vadd.f32 %v3174_v21, %v3892_v51 }
 0x3bc   : > { %v2180_v18 = vpop.f32.mrf.mxu1 }
 0x3bd   : > { %2422 = vst [vmem:[%s3899_s12 + $0x1f8] sm:$0xff] %v2186_v45  ;;  %v2181_v2 = vadd.f32 %v3892_v51, %v2180_v18 }
 0x3bf   : > { %2421 = vst [vmem:[%s3899_s12 + $0x1f0] sm:$0xff] %v2181_v2 }
 0x3c0 PF: > { %s17_s24 = sadd.s32 1, %s3190_s24  }
 0x3c1   : > { %p14_p4 = scmp.ge.s32.totalorder %s17_s24, 4  }
 0x3c3   :  { %16 = sbr.rel (!%p14_p4) target bundleno = 1 (0x1), region = 80 }

</bundles_post_ra>
